<compile_context>
chip_gen: v7x
topology: tpu7x:2x2x1
jax: 0.10.0
libtpu: 0.0.40
codegen_flags: <defaults>
</compile_context>

<pallas_src>
import functools

import jax
import jax.numpy as jnp
from jax.experimental import pallas as pl
from jax.experimental.pallas import tpu as pltpu

NUM_BOND_TYPE = 6
NUM_BOND_DIRECTION = 3
BN_EPS = 1e-5

LANE = 128                            # feature / hidden dims padded to this
ROW_PAD = 256                         # node dim padded to a multiple of this
RESIDENT_H_BUDGET = 24 * 1024 * 1024  # double-buffered resident-h byte cap


def _round_up(x, m):
    return (x + m - 1) // m * m


def _vmem_limit_bytes():
    # ~100 MiB on v5e/v6e (128 MiB physical VMEM), ~52 MiB on v7x (64 MiB).
    try:
        cap = int(pltpu.get_tpu_info().vmem_capacity_bytes)
        return max(32 * 1024 * 1024,
                   min(cap - 12 * 1024 * 1024, 100 * 1024 * 1024))
    except Exception:
        return 48 * 1024 * 1024


def _choose_tile_n(n_pad):
    # >= 2 row tiles so v7x shards the "parallel" axis over both TensorCores;
    # big tiles on big graphs so per-step overhead / finalize is amortised.
    if n_pad >= 2048 and n_pad % 512 == 0:
        return 512
    if n_pad >= 512:
        return 256
    return max(128, n_pad // 2)


def _choose_tile_k(n_pad):
    for cand in (1024, 512, 256, 128):
        if n_pad % cand == 0:
            return cand
    return n_pad


# ---------------------------------------------------------------------------
# Kernel 1: GIN aggregation + 2-layer MLP + masked partial BN statistics.
#   grid = (row tiles i [parallel], source blocks k [arbitrary])
#   aggr(i) = edge_msg(i) + sum_k A(i,k) @ h(k)      (f32 VMEM accumulator)
#   at last k: h2 = W2 @ relu(W1 @ aggr + b1) + b2; write h2 tile and the
#              per-tile masked [sum, sumsq] BN statistics.
# ---------------------------------------------------------------------------
def gin_mlp_kernel(a_ref, x_ref, em_ref, w1_ref, b1_ref, w2_ref, b2_ref,
                   h2_ref, stats_ref, acc_ref,
                   *, n_real, tile_n, tile_k, resident_h):
    i = pl.program_id(0)
    k = pl.program_id(1)
    nk = pl.num_programs(1)

    # Masked-row indicator for BN stats, computed at kernel TOP LEVEL (never
    # bind pl.program_id inside a pl.when body — interpret-mode limitation).
    row = i * tile_n + jax.lax.broadcasted_iota(jnp.int32, (tile_n, 1), 0)
    mask = (row < n_real).astype(jnp.float32)

    @pl.when(k == 0)
    def _init():
        # Seed the accumulator with the pre-aggregated edge message tile.
        acc_ref[...] = em_ref[...]

    if resident_h:
        x_blk = x_ref[pl.ds(k * tile_k, tile_k), :]   # h resident in VMEM
    else:
        x_blk = x_ref[...]                            # streamed per k block
    # bf16 x bf16 -> f32 accumulate: native MXU path, no upcast temp.
    acc_ref[...] += jnp.dot(a_ref[...], x_blk,
                            preferred_element_type=jnp.float32)

    @pl.when(k == nk - 1)
    def _finalize():
        aggr = acc_ref[...]
        h1 = jnp.dot(aggr, w1_ref[...],
                     preferred_element_type=jnp.float32) + b1_ref[...]
        h1 = jnp.maximum(h1, 0.0)
        h2 = jnp.dot(h1, w2_ref[...],
                     preferred_element_type=jnp.float32) + b2_ref[...]
        h2_ref[...] = h2

        # Masked partial BatchNorm statistics (padded rows excluded).
        hm = h2 * mask
        s = jnp.sum(hm, axis=0, keepdims=True)           # (1, d_pad)
        ss = jnp.sum(hm * h2, axis=0, keepdims=True)      # (1, d_pad)
        stats_ref[0] = jnp.concatenate(
            [s, ss, jnp.zeros((6, h2.shape[1]), jnp.float32)], axis=0)


# ---------------------------------------------------------------------------
# Kernel 2: streaming BN-apply (precomputed per-feature scale/shift) + ReLU.
#   grid = (row tiles i [parallel])
# ---------------------------------------------------------------------------
def bn_act_kernel(h2_ref, scale_ref, shift_ref, o_ref, *, apply_relu):
    h = h2_ref[...] * scale_ref[...] + shift_ref[...]
    if apply_relu:
        h = jnp.maximum(h, 0.0)
    o_ref[...] = h.astype(o_ref.dtype)


# ---------------------------------------------------------------------------
# One GIN layer = (kernel 1) + tiny JAX stats reduce + (kernel 2).
# ---------------------------------------------------------------------------
def gin_layer(A, h, edge_msg, p, *, n_real, apply_relu, vmem_limit):
    n_pad, d_pad = h.shape
    hid_pad = p["w1"].shape[1]
    tile_n = _choose_tile_n(n_pad)
    tile_k = _choose_tile_k(n_pad)
    n_tiles = n_pad // tile_n
    n_kblk = n_pad // tile_k

    resident_h = (2 * n_pad * d_pad * h.dtype.itemsize) <= RESIDENT_H_BUDGET
    if resident_h:
        h_spec = pl.BlockSpec((n_pad, d_pad), lambda i, k: (0, 0))
        h_bytes = h.size * h.dtype.itemsize               # loaded once
    else:
        h_spec = pl.BlockSpec((tile_k, d_pad), lambda i, k: (k, 0))
        h_bytes = n_tiles * h.size * h.dtype.itemsize      # re-streamed

    flops = (2 * n_pad * n_pad * d_pad
             + 2 * n_pad * d_pad * hid_pad
             + 2 * n_pad * hid_pad * d_pad)
    bytes_accessed = (A.size * A.dtype.itemsize
                      + h_bytes
                      + edge_msg.size * edge_msg.dtype.itemsize
                      + (p["w1"].size + p["b1"].size
                         + p["w2"].size + p["b2"].size) * 4    # once per layer
                      + n_pad * d_pad * 4                      # h2 write
                      + n_tiles * 8 * d_pad * 4)               # stats write

    h2, stats = pl.pallas_call(
        functools.partial(gin_mlp_kernel, n_real=n_real, tile_n=tile_n,
                          tile_k=tile_k, resident_h=resident_h),
        out_shape=(jax.ShapeDtypeStruct((n_pad, d_pad), jnp.float32),
                   jax.ShapeDtypeStruct((n_tiles, 8, d_pad), jnp.float32)),
        grid_spec=pltpu.PrefetchScalarGridSpec(
            num_scalar_prefetch=0,
            grid=(n_tiles, n_kblk),
            in_specs=[
                pl.BlockSpec((tile_n, tile_k), lambda i, k: (i, k)),   # A
                h_spec,                                                # h
                pl.BlockSpec((tile_n, d_pad), lambda i, k: (i, 0)),    # edge_msg
                pl.BlockSpec((d_pad, hid_pad), lambda i, k: (0, 0)),   # w1
                pl.BlockSpec((1, hid_pad), lambda i, k: (0, 0)),       # b1
                pl.BlockSpec((hid_pad, d_pad), lambda i, k: (0, 0)),   # w2
                pl.BlockSpec((1, d_pad), lambda i, k: (0, 0)),         # b2
            ],
            out_specs=(
                pl.BlockSpec((tile_n, d_pad), lambda i, k: (i, 0)),    # h2
                pl.BlockSpec((1, 8, d_pad), lambda i, k: (i, 0, 0)),   # stats
            ),
            scratch_shapes=[pltpu.VMEM((tile_n, d_pad), jnp.float32)],
        ),
        compiler_params=pltpu.CompilerParams(
            dimension_semantics=("parallel", "arbitrary"),
            vmem_limit_bytes=vmem_limit),
        cost_estimate=pl.CostEstimate(flops=int(flops), transcendentals=0,
                                      bytes_accessed=int(bytes_accessed)),
    )(A, h, edge_msg, p["w1"], p["b1"], p["w2"], p["b2"])

    # Reduce per-tile stats ONCE per layer into per-feature scale/shift
    # (tiny (n_tiles, d_pad) reduction -> plain JAX).
    inv_n = 1.0 / float(n_real)
    mean = jnp.sum(stats[:, 0, :], axis=0, keepdims=True) * inv_n
    ex2 = jnp.sum(stats[:, 1, :], axis=0, keepdims=True) * inv_n
    var = jnp.maximum(ex2 - mean * mean, 0.0)
    scale = p["gamma"] * jax.lax.rsqrt(var + BN_EPS)       # (1, d_pad)
    shift = p["beta"] - mean * scale                       # (1, d_pad)

    out = pl.pallas_call(
        functools.partial(bn_act_kernel, apply_relu=apply_relu),
        out_shape=jax.ShapeDtypeStruct((n_pad, d_pad), h.dtype),   # bf16
        grid_spec=pltpu.PrefetchScalarGridSpec(
            num_scalar_prefetch=0,
            grid=(n_tiles,),
            in_specs=[
                pl.BlockSpec((tile_n, d_pad), lambda i: (i, 0)),   # h2
                pl.BlockSpec((1, d_pad), lambda i: (0, 0)),        # scale
                pl.BlockSpec((1, d_pad), lambda i: (0, 0)),        # shift
            ],
            out_specs=pl.BlockSpec((tile_n, d_pad), lambda i: (i, 0)),
        ),
        compiler_params=pltpu.CompilerParams(
            dimension_semantics=("parallel",),
            vmem_limit_bytes=vmem_limit),
    )(h2, scale, shift)
    return out


# ---------------------------------------------------------------------------
# Parameter init (deterministic, shapes match the PyTorch module)
# ---------------------------------------------------------------------------
def xavier_uniform(key, shape):
    fan_in, fan_out = shape
    bound = (6.0 / (fan_in + fan_out)) ** 0.5
    return jax.random.uniform(key, shape, jnp.float32, -bound, bound)


def init_gnn_params(key, num_layer, emb_dim):
    params = []
    for _ in range(num_layer):
        key, k1, k2, k3, k4 = jax.random.split(key, 5)
        params.append({
            # GINConv.mlp
            "w1": xavier_uniform(k1, (emb_dim, 2 * emb_dim)),
            "b1": jnp.zeros((1, 2 * emb_dim), jnp.float32),
            "w2": xavier_uniform(k2, (2 * emb_dim, emb_dim)),
            "b2": jnp.zeros((1, emb_dim), jnp.float32),
            # GINConv edge embeddings
            "edge_emb1": xavier_uniform(k3, (NUM_BOND_TYPE, emb_dim)),
            "edge_emb2": xavier_uniform(k4, (NUM_BOND_DIRECTION, emb_dim)),
            # BatchNorm1d (default init)
            "gamma": jnp.ones((1, emb_dim), jnp.float32),
            "beta": jnp.zeros((1, emb_dim), jnp.float32),
        })
    return params


# ---------------------------------------------------------------------------
# GNN forward: glue (self-loops, tiny embedding gathers, segment-sum, padding)
# in JAX; per-layer hot path in the two Pallas kernels above.
# ---------------------------------------------------------------------------
def gnn_forward(params, x, edge_index, edge_attr, JK="last"):
    N, D = x.shape
    num_layer = len(params)

    d_pad = _round_up(D, LANE)
    hid_pad = _round_up(2 * D, LANE)
    n_pad = _round_up(N, ROW_PAD)
    vmem_limit = _vmem_limit_bytes()

    # add_self_loops: append (i, i) edges with attr [4, 0] (PyG convention)
    loop = jnp.arange(N, dtype=edge_index.dtype)
    ei = jnp.concatenate([edge_index, jnp.stack([loop, loop])], axis=1)
    self_loop_attr = jnp.zeros((N, 2), edge_attr.dtype).at[:, 0].set(4)
    ea = jnp.concatenate([edge_attr, self_loop_attr], axis=0)
    src, dst = ei[0], ei[1]

    # dense (dst, src) adjacency with edge multiplicities; bf16 is exact for
    # integer multiplicities < 256 (assert when concretely checkable).
    A_f32 = jnp.zeros((n_pad, n_pad), jnp.float32).at[dst, src].add(1.0)
    try:
        max_mult = float(jnp.max(A_f32))
    except Exception:          # traced under jit; skip the eager check
        max_mult = None
    if max_mult is not None:
        assert max_mult < 256.0, "edge multiplicity too large for bf16 adjacency"
    A = A_f32.astype(jnp.bfloat16)

    # pad parameters once to lane-dense shapes (zero padding keeps padded
    # rows/cols of every intermediate exactly zero, so results are unchanged)
    def pad2(a, r, c, fill=0.0):
        out = jnp.full((r, c), fill, a.dtype)
        return out.at[:a.shape[0], :a.shape[1]].set(a)

    padded = []
    for p in params:
        padded.append({
            "w1": pad2(p["w1"], d_pad, hid_pad),
            "b1": pad2(p["b1"], 1, hid_pad),
            "w2": pad2(p["w2"], hid_pad, d_pad),
            "b2": pad2(p["b2"], 1, d_pad),
            "gamma": pad2(p["gamma"], 1, d_pad, fill=1.0),
            "beta": pad2(p["beta"], 1, d_pad),
            "edge_emb1": pad2(p["edge_emb1"], NUM_BOND_TYPE, d_pad),
            "edge_emb2": pad2(p["edge_emb2"], NUM_BOND_DIRECTION, d_pad),
        })

    # node features carried in bf16 end-to-end (feeds the bf16 MXU directly)
    h_pad = (jnp.zeros((n_pad, d_pad), jnp.float32)
             .at[:N, :D].set(x)).astype(jnp.bfloat16)

    h_list = [x]
    for layer in range(num_layer):
        p = padded[layer]
        # tiny embedding-table gathers + per-destination segment-sum (glue).
        Em = (jnp.take(p["edge_emb1"], ea[:, 0], axis=0)
              + jnp.take(p["edge_emb2"], ea[:, 1], axis=0))
        edge_msg = jnp.zeros((n_pad, d_pad), jnp.float32).at[dst].add(Em)
        h_pad = gin_layer(A, h_pad, edge_msg, p, n_real=N,
                          apply_relu=(layer != num_layer - 1),
                          vmem_limit=vmem_limit)
        h_list.append(h_pad[:N, :D].astype(jnp.float32))

    # drop_ratio = 0 -> F.dropout is the identity.
    if JK == "last":
        return h_list[-1]
    elif JK == "concat":
        return jnp.concatenate(h_list, axis=1)
    elif JK == "max":
        return jnp.max(jnp.stack(h_list, axis=0), axis=0)
    elif JK == "sum":
        return jnp.sum(jnp.stack(h_list, axis=0), axis=0)
    else:
        raise ValueError(JK)


# ---------------------------------------------------------------------------
# Pure-JAX reference (sparse scatter formulation) for correctness checking.
# ---------------------------------------------------------------------------
def gnn_reference(params, x, edge_index, edge_attr, JK="last"):
    N = x.shape[0]
    loop = jnp.arange(N, dtype=edge_index.dtype)
    ei = jnp.concatenate([edge_index, jnp.stack([loop, loop])], axis=1)
    sl = jnp.zeros((N, 2), edge_attr.dtype).at[:, 0].set(4)
    ea = jnp.concatenate([edge_attr, sl], axis=0)
    num_layer = len(params)
    h_list = [x]
    h = x
    for layer, p in enumerate(params):
        em = (jnp.take(p["edge_emb1"], ea[:, 0], axis=0)
              + jnp.take(p["edge_emb2"], ea[:, 1], axis=0))
        msg = h[ei[0]] + em
        aggr = jnp.zeros_like(h).at[ei[1]].add(msg)
        h1 = jnp.maximum(aggr @ p["w1"] + p["b1"], 0.0)
        h2 = h1 @ p["w2"] + p["b2"]
        mean = jnp.mean(h2, axis=0, keepdims=True)
        var = jnp.mean((h2 - mean) ** 2, axis=0, keepdims=True)
        h = (h2 - mean) * jax.lax.rsqrt(var + BN_EPS) * p["gamma"] + p["beta"]
        if layer != num_layer - 1:
            h = jnp.maximum(h, 0.0)
        h_list.append(h)
    if JK == "last":
        return h_list[-1]
    elif JK == "concat":
        return jnp.concatenate(h_list, axis=1)
    elif JK == "max":
        return jnp.max(jnp.stack(h_list, axis=0), axis=0)
    elif JK == "sum":
        return jnp.sum(jnp.stack(h_list, axis=0), axis=0)
    else:
        raise ValueError(JK)


# ---------------------------------------------------------------------------
if __name__ == "__main__":
    num_layer = 2
    emb_dim = 32
    N = 16          # number of nodes
    E = 24          # number of (directed) edges

    key = jax.random.PRNGKey(0)
    k_param, k_x, k_src, k_dst, k_bt, k_bd = jax.random.split(key, 6)

    params = init_gnn_params(k_param, num_layer, emb_dim)

    x = jax.random.normal(k_x, (N, emb_dim), jnp.float32)
    edge_index = jnp.stack([
        jax.random.randint(k_src, (E,), 0, N, dtype=jnp.int32),
        jax.random.randint(k_dst, (E,), 0, N, dtype=jnp.int32),
    ])
    edge_attr = jnp.stack([
        jax.random.randint(k_bt, (E,), 0, NUM_BOND_TYPE, dtype=jnp.int32),
        jax.random.randint(k_bd, (E,), 0, NUM_BOND_DIRECTION, dtype=jnp.int32),
    ], axis=1)

    out = gnn_forward(params, x, edge_index, edge_attr, JK="last")
    out = jax.block_until_ready(out)
    assert out.shape == (N, emb_dim)

    ref = gnn_reference(params, x, edge_index, edge_attr, JK="last")
    ref = jax.block_until_ready(ref)
    max_err = float(jnp.max(jnp.abs(out - ref)))
    # h is carried in bf16 (per perf review), so allow bf16-level error after
    # two BatchNorm normalisations.
    assert max_err < 1e-1, f"kernel vs reference mismatch: {max_err}"

    print("KERNEL_OK")
</pallas_src>

<mosaic_0001>
module attributes {stable_mosaic.version = 11 : i64} {
  func.func @gin_mlp_kernel(%arg0: i32, %arg1: i32, %arg2: memref<128x256xbf16, #tpu.memory_space<vmem>>, %arg3: memref<256x128xbf16, #tpu.memory_space<vmem>>, %arg4: memref<128x128xf32, #tpu.memory_space<vmem>>, %arg5: memref<128x128xf32, #tpu.memory_space<vmem>>, %arg6: memref<1x128xf32, #tpu.memory_space<vmem>>, %arg7: memref<128x128xf32, #tpu.memory_space<vmem>>, %arg8: memref<1x128xf32, #tpu.memory_space<vmem>>, %arg9: memref<128x128xf32, #tpu.memory_space<vmem>>, %arg10: memref<1x8x128xf32, #tpu.memory_space<vmem>>, %arg11: memref<128x128xf32, #tpu.memory_space<vmem>>) attributes {dimension_semantics = [#tpu.dimension_semantics<parallel>, #tpu.dimension_semantics<arbitrary>], iteration_bounds = array<i64: 2, 1>, scalar_prefetch = 0 : i64, scratch_operands = 1 : i64, tpu.core_type = #tpu.core_type<tc>, window_params = [{transform_indices = @transform_0, window_bounds = array<i64: 128, 256>}, {pipeline_mode = #tpu.pipeline_mode<synchronous>, transform_indices = @transform_1, window_bounds = array<i64: 256, 128>}, {transform_indices = @transform_2, window_bounds = array<i64: 128, 128>}, {pipeline_mode = #tpu.pipeline_mode<synchronous>, transform_indices = @transform_3, window_bounds = array<i64: 128, 128>}, {pipeline_mode = #tpu.pipeline_mode<synchronous>, transform_indices = @transform_4, window_bounds = array<i64: 1, 128>}, {pipeline_mode = #tpu.pipeline_mode<synchronous>, transform_indices = @transform_5, window_bounds = array<i64: 128, 128>}, {pipeline_mode = #tpu.pipeline_mode<synchronous>, transform_indices = @transform_6, window_bounds = array<i64: 1, 128>}, {transform_indices = @transform_7, window_bounds = array<i64: 128, 128>}, {transform_indices = @transform_8, window_bounds = array<i64: 1, 8, 128>}]} {
    %c128_i32 = arith.constant 128 : i32
    %0 = arith.muli %arg0, %c128_i32 : i32
    %1 = tpu.iota {dimensions = array<i32: 0>} : vector<128x1xi32>
    %2 = vector.broadcast %0 : i32 to vector<128x1xi32>
    %3 = arith.addi %2, %1 : vector<128x1xi32>
    %c16_i32 = arith.constant 16 : i32
    %4 = vector.broadcast %c16_i32 : i32 to vector<128x1xi32>
    %5 = arith.cmpi slt, %3, %4 : vector<128x1xi32>
    %6 = arith.extui %5 : vector<128x1xi1> to vector<128x1xi32>
    %7 = arith.sitofp %6 : vector<128x1xi32> to vector<128x1xf32>
    %c0_i32 = arith.constant 0 : i32
    %8 = arith.cmpi eq, %arg1, %c0_i32 : i32
    %9 = arith.extui %8 : i1 to i32
    %c0_i32_0 = arith.constant 0 : i32
    %10 = arith.cmpi ne, %9, %c0_i32_0 : i32
    scf.if %10 {
      %c0_9 = arith.constant 0 : index
      %c0_10 = arith.constant 0 : index
      %22 = vector.load %arg4[%c0_9, %c0_10] : memref<128x128xf32, #tpu.memory_space<vmem>>, vector<128x128xf32>
      %c0_11 = arith.constant 0 : index
      %c0_12 = arith.constant 0 : index
      %23 = vector.load %arg11[%c0_11, %c0_12] : memref<128x128xf32, #tpu.memory_space<vmem>>, vector<128x128xf32>
      tpu.vector_store %arg11[%c0_11, %c0_12], %22 {strides = array<i32>} : memref<128x128xf32, #tpu.memory_space<vmem>>, vector<128x128xf32>,
    } else {
    }
    %c256_i32 = arith.constant 256 : i32
    %11 = arith.muli %arg1, %c256_i32 : i32
    %12 = arith.index_cast %11 : i32 to index
    %c0 = arith.constant 0 : index
    %13 = vector.load %arg3[%12, %c0] : memref<256x128xbf16, #tpu.memory_space<vmem>>, vector<256x128xbf16>
    %c0_1 = arith.constant 0 : index
    %c0_2 = arith.constant 0 : index
    %14 = vector.load %arg11[%c0_1, %c0_2] : memref<128x128xf32, #tpu.memory_space<vmem>>, vector<128x128xf32>
    %c0_3 = arith.constant 0 : index
    %c0_4 = arith.constant 0 : index
    %15 = vector.load %arg2[%c0_3, %c0_4] : memref<128x256xbf16, #tpu.memory_space<vmem>>, vector<128x256xbf16>
    %cst = arith.constant dense<0.000000e+00> : vector<128x128xf32>
    %16 = tpu.matmul %15, %13, %cst {dimension_numbers = #tpu.dot_dimension_numbers<[1], [0], [0], [1], [0, 0, 1, 1], [], []>} : vector<128x256xbf16>, vector<256x128xbf16>, vector<128x128xf32> -> vector<128x128xf32>
    %17 = arith.addf %14, %16 : vector<128x128xf32>
    %c0_5 = arith.constant 0 : index
    %c0_6 = arith.constant 0 : index
    %18 = vector.load %arg11[%c0_5, %c0_6] : memref<128x128xf32, #tpu.memory_space<vmem>>, vector<128x128xf32>
    tpu.vector_store %arg11[%c0_5, %c0_6], %17 {strides = array<i32>} : memref<128x128xf32, #tpu.memory_space<vmem>>, vector<128x128xf32>,
    %c0_i32_7 = arith.constant 0 : i32
    %19 = arith.cmpi eq, %arg1, %c0_i32_7 : i32
    %20 = arith.extui %19 : i1 to i32
    %c0_i32_8 = arith.constant 0 : i32
    %21 = arith.cmpi ne, %20, %c0_i32_8 : i32
    scf.if %21 {
      %c0_9 = arith.constant 0 : index
      %c0_10 = arith.constant 0 : index
      %22 = vector.load %arg11[%c0_9, %c0_10] : memref<128x128xf32, #tpu.memory_space<vmem>>, vector<128x128xf32>
      %c0_11 = arith.constant 0 : index
      %c0_12 = arith.constant 0 : index
      %23 = vector.load %arg5[%c0_11, %c0_12] : memref<128x128xf32, #tpu.memory_space<vmem>>, vector<128x128xf32>
      %cst_13 = arith.constant dense<0.000000e+00> : vector<128x128xf32>
      %24 = tpu.matmul %22, %23, %cst_13 {dimension_numbers = #tpu.dot_dimension_numbers<[1], [0], [0], [1], [0, 0, 1, 1], [], []>} : vector<128x128xf32>, vector<128x128xf32>, vector<128x128xf32> -> vector<128x128xf32>
      %c0_14 = arith.constant 0 : index
      %c0_15 = arith.constant 0 : index
      %25 = vector.load %arg6[%c0_14, %c0_15] : memref<1x128xf32, #tpu.memory_space<vmem>>, vector<1x128xf32>
      %26 = vector.broadcast %25 : vector<1x128xf32> to vector<128x128xf32>
      %27 = arith.addf %24, %26 : vector<128x128xf32>
      %cst_16 = arith.constant 0.000000e+00 : f32
      %28 = vector.broadcast %cst_16 : f32 to vector<128x128xf32>
      %29 = arith.maximumf %27, %28 : vector<128x128xf32>
      %c0_17 = arith.constant 0 : index
      %c0_18 = arith.constant 0 : index
      %30 = vector.load %arg7[%c0_17, %c0_18] : memref<128x128xf32, #tpu.memory_space<vmem>>, vector<128x128xf32>
      %cst_19 = arith.constant dense<0.000000e+00> : vector<128x128xf32>
      %31 = tpu.matmul %29, %30, %cst_19 {dimension_numbers = #tpu.dot_dimension_numbers<[1], [0], [0], [1], [0, 0, 1, 1], [], []>} : vector<128x128xf32>, vector<128x128xf32>, vector<128x128xf32> -> vector<128x128xf32>
      %c0_20 = arith.constant 0 : index
      %c0_21 = arith.constant 0 : index
      %32 = vector.load %arg8[%c0_20, %c0_21] : memref<1x128xf32, #tpu.memory_space<vmem>>, vector<1x128xf32>
      %33 = vector.broadcast %32 : vector<1x128xf32> to vector<128x128xf32>
      %34 = arith.addf %31, %33 : vector<128x128xf32>
      %c0_22 = arith.constant 0 : index
      %c0_23 = arith.constant 0 : index
      %35 = vector.load %arg9[%c0_22, %c0_23] : memref<128x128xf32, #tpu.memory_space<vmem>>, vector<128x128xf32>
      tpu.vector_store %arg9[%c0_22, %c0_23], %34 {strides = array<i32>} : memref<128x128xf32, #tpu.memory_space<vmem>>, vector<128x128xf32>,
      %36 = vector.broadcast %7 : vector<128x1xf32> to vector<128x128xf32>
      %37 = arith.mulf %34, %36 : vector<128x128xf32>
      %cst_24 = arith.constant dense<0.000000e+00> : vector<128xf32>
      %38 = vector.multi_reduction <add>, %37, %cst_24 [0] : vector<128x128xf32> to vector<128xf32>
      %39 = vector.shape_cast %38 : vector<128xf32> to vector<1x128xf32>
      %40 = arith.mulf %37, %34 : vector<128x128xf32>
      %cst_25 = arith.constant dense<0.000000e+00> : vector<128xf32>
      %41 = vector.multi_reduction <add>, %40, %cst_25 [0] : vector<128x128xf32> to vector<128xf32>
      %42 = vector.shape_cast %41 : vector<128xf32> to vector<1x128xf32>
      %cst_26 = arith.constant 0.000000e+00 : f32
      %43 = vector.broadcast %cst_26 : f32 to vector<6x128xf32>
      %44 = tpu.concatenate %39, %42, %43 in 0 : vector<1x128xf32>, vector<1x128xf32>, vector<6x128xf32> -> vector<8x128xf32>
      %c0_27 = arith.constant 0 : index
      %c0_28 = arith.constant 0 : index
      %c0_29 = arith.constant 0 : index
      %45 = vector.load %arg10[%c0_27, %c0_28, %c0_29] : memref<1x8x128xf32, #tpu.memory_space<vmem>>, vector<1x8x128xf32>
      %46 = vector.shape_cast %45 : vector<1x8x128xf32> to vector<8x128xf32>
      %47 = vector.shape_cast %44 : vector<8x128xf32> to vector<1x8x128xf32>
      tpu.vector_store %arg10[%c0_27, %c0_28, %c0_29], %47 {strides = array<i32>} : memref<1x8x128xf32, #tpu.memory_space<vmem>>, vector<1x8x128xf32>,
    } else {
    }
    return
  }
  func.func @transform_0(%arg0: i32, %arg1: i32) -> (i32, i32) {
    %c0_i32 = arith.constant 0 : i32
    return %arg0, %arg1 : i32, i32
  }
  func.func @transform_1(%arg0: i32, %arg1: i32) -> (i32, i32) {
    %c0_i32 = arith.constant 0 : i32
    %c0_i32_0 = arith.constant 0 : i32
    %c0_i32_1 = arith.constant 0 : i32
    return %c0_i32, %c0_i32_0 : i32, i32
  }
  func.func @transform_2(%arg0: i32, %arg1: i32) -> (i32, i32) {
    %c0_i32 = arith.constant 0 : i32
    %c0_i32_0 = arith.constant 0 : i32
    return %arg0, %c0_i32 : i32, i32
  }
  func.func @transform_3(%arg0: i32, %arg1: i32) -> (i32, i32) {
    %c0_i32 = arith.constant 0 : i32
    %c0_i32_0 = arith.constant 0 : i32
    %c0_i32_1 = arith.constant 0 : i32
    return %c0_i32, %c0_i32_0 : i32, i32
  }
  func.func @transform_4(%arg0: i32, %arg1: i32) -> (i32, i32) {
    %c0_i32 = arith.constant 0 : i32
    %c0_i32_0 = arith.constant 0 : i32
    %c0_i32_1 = arith.constant 0 : i32
    return %c0_i32, %c0_i32_0 : i32, i32
  }
  func.func @transform_5(%arg0: i32, %arg1: i32) -> (i32, i32) {
    %c0_i32 = arith.constant 0 : i32
    %c0_i32_0 = arith.constant 0 : i32
    %c0_i32_1 = arith.constant 0 : i32
    return %c0_i32, %c0_i32_0 : i32, i32
  }
  func.func @transform_6(%arg0: i32, %arg1: i32) -> (i32, i32) {
    %c0_i32 = arith.constant 0 : i32
    %c0_i32_0 = arith.constant 0 : i32
    %c0_i32_1 = arith.constant 0 : i32
    return %c0_i32, %c0_i32_0 : i32, i32
  }
  func.func @transform_7(%arg0: i32, %arg1: i32) -> (i32, i32) {
    %c0_i32 = arith.constant 0 : i32
    %c0_i32_0 = arith.constant 0 : i32
    return %arg0, %c0_i32 : i32, i32
  }
  func.func @transform_8(%arg0: i32, %arg1: i32) -> (i32, i32, i32) {
    %c0_i32 = arith.constant 0 : i32
    %c0_i32_0 = arith.constant 0 : i32
    %c0_i32_1 = arith.constant 0 : i32
    return %arg0, %c0_i32, %c0_i32_0 : i32, i32, i32
  }
}

</mosaic_0001>

<bundles_post_ra>
// kernel: tpu_custom_call.1
= control target key start
LH: loop header
LB: loop body
LE: loop exit
PB: predicated region body
PF: predicated region fallthrough
CT: control target
= control target key end

     0   :  { %s2963_s0 = inlined_call_operand.hbm [shape: bf16[256,256], index: 0, kind: input, shape index: {}]   ;;  %s2964_s1 = inlined_call_operand.hbm [shape: bf16[256,128], index: 1, kind: input, shape index: {}]   ;;  %s2965_s2 = inlined_call_operand.hbm [shape: f32[256,128], index: 2, kind: input, shape index: {}]   ;;  %s2966_s3 = inlined_call_operand.hbm [shape: f32[128,128], index: 3, kind: input, shape index: {}]   ;;  %s2967_s4 = inlined_call_operand.vmem [shape: f32[1,128], index: 4, kind: input, shape index: {}]   ;;  %s2968_s5 = inlined_call_operand.hbm [shape: f32[128,128], index: 5, kind: input, shape index: {}]   ;;  %s2969_s6 = inlined_call_operand.vmem [shape: f32[1,128], index: 6, kind: input, shape index: {}]   ;;  %s2970_s7 = inlined_call_operand.hbm [shape: f32[256,128], index: 7, kind: output, shape index: {0}]   ;;  %s2971_s8 = inlined_call_operand.hbm [shape: f32[2,8,128], index: 8, kind: output, shape index: {1}]  }
   0x1   :  { %2993 = sst [smem:[#allocation30_spill]] %s2963_s0 }
   0x2   :  { %2994 = sst [smem:[#allocation31_spill]] %s2964_s1 }
   0x3   :  { %2995 = sst [smem:[#allocation32_spill]] %s2969_s6 }
   0x4   :  { %2996 = sst [smem:[#allocation33_spill]] %s2970_s7 }
   0x5   :  { %2997 = sst [smem:[#allocation34_spill]] %s2971_s8 }
   0x6   :  { %14 = vsyncpa [#allocation4], 0 }
   0x7   :  { %16 = vsyncpa [#allocation4 + $0x1], 0 }
   0x8   :  { %17 = vsyncpa [#allocation7], 0 }
   0x9   :  { %18 = vsyncpa [#allocation11], 0 }
   0xa   :  { %19 = vsyncpa [#allocation5], 0 }
   0xb   :  { %21 = vsyncpa [#allocation5 + $0x1], 0 }
   0xc   :  { %22 = vsyncpa [#allocation14], 0 }
   0xd   :  { %24 = vsyncpa [#allocation14 + $0x1], 0  ;;  %s2469_s27 = smov 0   ;;  %s2471_s28 = smov 0  }
   0xe   :  { %s2473_s29 = smov 0   ;;  %s2475_s30 = smov 0  }
   0xf   :  { %s2477_s9 = smov 0   ;;  %s2479_s10 = smov 0  }
  0x10 LB: > { %2998 = sst [smem:[#allocation22_spill]] %s2388_s27  ;;  %s2500_s11 = sadd.s32 4294967295, %s2408_s10   ;;  %s2408_s10 = sphi %s2479_s10, %s30_s10   ;;  %s2404_s9 = sphi %s2477_s9, %s3047_s9   ;;  %s2400_s30 = sphi %s2475_s30, %s3046_s30   ;;  %s2396_s29 = sphi %s2473_s29, %s3042_s29   ;;  %s2392_s28 = sphi %s2471_s28, %s3045_s28   ;;  %s2388_s27 = sphi %s2469_s27, %s3044_s27  }
  0x11   : > { %2999 = sst [smem:[#allocation23_spill]] %s2396_s29  ;;  %s1597_s12 = sadd.s32 4294967294, %s2408_s10  }
  0x12   : > { %3000 = sst [smem:[#allocation24_spill]] %s2400_s30  ;;  %p64_p0 = scmp.ne.s32.totalorder %s2392_s28, %s2388_s27 }
  0x13   : > { %3001 = sst [smem:[#allocation25_spill]] %s2408_s10  ;;  %p2972_p1 = scmp.eq.s32.totalorder %s2500_s11, 0 }
  0x14   : > { %p225_p3 = scmp.eq.s32.totalorder %s1597_s12, 1  ;;  %p1598_p5 = scmp.ge.s32.totalorder %s2408_s10, 1 }
  0x15   : > { %p2509_p4 = por %p2972_p1, %p64_p0  ;;  %p258_p7 = scmp.lt.s32.totalorder %s2408_s10, 3 }
  0x16   : > { %p2514_p6 = por %p225_p3, %p64_p0  ;;  %s2410_s16 = smov [#allocation6]  }
  0x17   : > { %s3002_s13 = scalar_select %p2509_p4, 1, 0 }
  0x18   : > { %s3003_s14 = scalar_select %p2514_p6, 1, 0 }
  0x19   : > { %p2519_p8 = pnand %p1598_p5, %p258_p7  ;;  %s270_s17 = sshll.u32 %s2410_s16, 4  ;;  %s271_s17 = int_to_ptr.vmem [resolvable:$true] %s270_s17 }
  0x1a   : > { %3004 = sst [smem:[#allocation26_spill]] %s3003_s14  ;;  %s42_s19 = sadd.s32 1, %s2404_s9 }
  0x1b   : > { %s3005_s15 = scalar_select %p2519_p8, 1, 0 }
  0x1c   : > { %p2004_p9 = pneg %p2519_p8  ;;  %s3007_s1 = sld [smem:[#allocation31_spill]] }
  0x1e   : > { %p2528_p11 = pnand %p2004_p9, %p2972_p1 }
  0x20   : > { %s3006_s18 = scalar_select %p2528_p11, 1, 0 }
  0x21   : > { %p2541_p13 = pneg %p2528_p11 }
  0x22   : > { %s2134_s22 = scalar_lea.hbm %s3007_s1, 2048 }
  0x23   : > { %p2135_p12 = scmp.ne.s32.totalorder %s3007_s1, %s2134_s22  ;;  %p2141_p5 = scmp.lt.u32.totalorder %s2134_s22, %s3007_s1 }
  0x25   : > { %p2137_p0 = pnand %p2541_p13, %p2135_p12 }
  0x27   : > { %p2138_p3 = pneg %p2137_p0 }
  0x29   : > { %p2143_p7 = pnand %p2141_p5, %p2138_p3 }
  0x2b   : > { %2146 = shalt.err (!%p2143_p7)
}
  0x2c   : > { %s2147_s16 = scalar_lea.vmem %s271_s17, 2048  ;;  %p2155_p2 = scmp.lt.s32.totalorder %s271_s17, %s271_s17 }
  0x2d   : > { %p2148_p9 = scmp.ne.s32.totalorder %s271_s17, %s2147_s16  ;;  %p2156_p6 = scmp.lt.s32.totalorder %s2147_s16, %s2147_s16 }
  0x2f   : > { %p2150_p10 = pnand %p2148_p9, %p2541_p13  ;;  %p2157_p4 = por %p2156_p6, %p2155_p2 }
  0x31   : > { %p2151_p1 = pneg %p2150_p10 }
  0x33   : > { %p2158_p8 = pnand %p2157_p4, %p2151_p1 }
  0x35   : > { %2161 = shalt.err (!%p2158_p8)
}
  0x36   : > { %s2411_s20 = smov 64   ;;  %s2412_s21 = smov 4  }
  0x37   : > { %2007 = dma.hbm_to_vmem [thread:$0]  (!%p2528_p11), %s3007_s1, 2048, %s271_s17, [#allocation7], %s2411_s20, %s2411_s20, %s2412_s21  }
  0x38   : > { %p44_p1 = scmp.ge.s32.totalorder %s42_s19, 2  ;;  %s51_s24 = sadd.s32 1, %s2396_s29 }
  0x39   : > { %p58_p2 = scmp.ne.s32.totalorder %s2396_s29, %s2392_s28  ;;  %p59_p4 = scmp.eq.s32.totalorder %s2408_s10, 0 }
  0x3a   : > { %s3049_s19 = smov (%p44_p1, %s42_s19), 0  ;;  %p3011_p8 = scmp.eq.s32.totalorder %s2500_s11, 1 }
  0x3b   : > { %3009 = sst [smem:[#allocation27_spill]] %s3049_s19  ;;  %p2563_p6 = por %p59_p4, %p58_p2 }
  0x3c   : > { %p2569_p10 = por %p3011_p8, %p58_p2  ;;  %s46_s16 = ssub.s32 %s2404_s9, %s3049_s19 }
  0x3d   : > { %p49_p12 = scmp.eq.s32.totalorder %s46_s16, 0  ;;  %p2031_p0 = scmp.lt.s32.totalorder %s2408_s10, 2 }
  0x3e   : > { %s3012_s12 = scalar_select %p2569_p10, 1, 0 }
  0x3f   : > { %s316_s17 = sand.u32 1, %s2408_s10   ;;  %s318_s21 = sand.u32 1, %s2396_s29  }
  0x40   : > { %3013 = sst [smem:[#allocation28_spill]] %s3012_s12  ;;  %s2581_s22 = sshll.u32 %s318_s21, 7 }
  0x41   : > { %s2578_s20 = scalar_select %p49_p12, %s2396_s29, %s51_s24  }
  0x42   : > { %s2978_s23 = sshll.u32 %s2404_s9, 11  ;;  %s3015_s0 = sld [smem:[#allocation30_spill]] }
  0x43   : > { %3014 = sst [smem:[#allocation29_spill]] %s2578_s20  ;;  %s320_s16 = scalar_lea.vmem [#allocation3], %s2581_s22 }
  0x44   : > { %s330_s19 = sshll.u32 %s320_s16, 4  ;;  %p2594_p3 = pnand %p2031_p0, %p2563_p6  ;;  %s2598_s19 = int_to_ptr.vmem [resolvable:$true] %s330_s19 }
  0x45   : > { %s2600_s21 = scalar_lea.sflag [#allocation4], %s316_s17 }
  0x46   : > { %s3016_s24 = scalar_select %p2594_p3, 1, 0 }
  0x47   : > { %p2990_p7 = pneg %p2594_p3 }
  0x48   : > { %s2589_s27 = scalar_lea.hbm %s3015_s0, %s2978_s23  ;;  %s2167_s16 = scalar_lea.hbm %s3015_s0, 4096 }
  0x49   : > { %s2162_s1 = scalar_lea.hbm %s2589_s27, 2048  ;;  %p2168_p2 = scmp.lt.u32.totalorder %s2589_s27, %s3015_s0 }
  0x4a   : > { %p2163_p5 = scmp.ne.s32.totalorder %s2589_s27, %s2162_s1  ;;  %p2169_p4 = scmp.lt.u32.totalorder %s2167_s16, %s2162_s1 }
  0x4b   : > { %p2171_p8 = scmp.lt.u32.totalorder %s2162_s1, %s2589_s27 }
  0x4c   : > { %p2165_p9 = pnand %p2990_p7, %p2163_p5  ;;  %p2170_p6 = por %p2169_p4, %p2168_p2 }
  0x4e   : > { %p2166_p1 = pneg %p2165_p9  ;;  %p2172_p12 = por %p2171_p8, %p2170_p6 }
  0x50   : > { %p2173_p0 = pnand %p2172_p12, %p2166_p1 }
  0x52   : > { %2176 = shalt.err (!%p2173_p0)
}
  0x53   : > { %s2177_s17 = scalar_lea.vmem %s2598_s19, 2048  ;;  %s2413_s14 = smov [#allocation3]  }
  0x54   : > { %p2178_p5 = scmp.ne.s32.totalorder %s2598_s19, %s2177_s17  ;;  %s2182_s26 = sshll.u32 %s2413_s14, 4  ;;  %s2183_s26 = int_to_ptr.vmem [resolvable:$false] %s2182_s26 }
  0x55   : > { %s2184_s20 = scalar_lea.vmem %s2183_s26, 4096  ;;  %p2185_p11 = scmp.lt.s32.totalorder %s2598_s19, %s2183_s26 }
  0x56   : > { %p2180_p9 = pnand %p2178_p5, %p2990_p7  ;;  %p2186_p2 = scmp.lt.s32.totalorder %s2184_s20, %s2177_s17 }
  0x58   : > { %p2181_p10 = pneg %p2180_p9  ;;  %p2187_p4 = por %p2186_p2, %p2185_p11 }
  0x5a   : > { %p2188_p6 = pnand %p2187_p4, %p2181_p10 }
  0x5c   : > { %2191 = shalt.err (!%p2188_p6)
}
  0x5d   : > { %s2414_s23 = smov 128   ;;  %s2415_s1 = smov 8  }
  0x5e   : > { %2017 = dma.hbm_to_vmem [thread:$0]  (!%p2594_p3), %s2589_s27, 2048, %s2598_s19, %s2600_s21, %s2414_s23, %s2414_s23, %s2415_s1  }
  0x5f   : > { %s3017_s16 = sshll.u32 %s2404_s9, 11  ;;  %s344_s20 = scalar_lea.vmem [#allocation8], %s2581_s22 }
  0x60   : > { %s2636_s26 = scalar_lea.hbm %s2965_s2, %s3017_s16  ;;  %s351_s0 = sshll.u32 %s344_s20, 4  ;;  %s2660_s0 = int_to_ptr.vmem [resolvable:$true] %s351_s0 }
  0x61   : > { %s2416_s29 = smov [#allocation9]   ;;  %s2192_s12 = scalar_lea.hbm %s2966_s3, 2048 }
  0x62   : > { %s283_s10 = sshll.u32 %s2416_s29, 4  ;;  %p2193_p11 = scmp.ne.s32.totalorder %s2966_s3, %s2192_s12  ;;  %s284_s10 = int_to_ptr.vmem [resolvable:$true] %s283_s10 }
  0x63   : > { %p2199_p8 = scmp.lt.u32.totalorder %s2192_s12, %s2966_s3 }
  0x64   : > { %p2195_p10 = pnand %p2193_p11, %p2541_p13 }
  0x66   : > { %p2196_p1 = pneg %p2195_p10 }
  0x68   : > { %p2201_p12 = pnand %p2199_p8, %p2196_p1 }
  0x6a   : > { %2204 = shalt.err (!%p2201_p12)
}
  0x6b   : > { %s2205_s22 = scalar_lea.vmem %s284_s10, 2048  ;;  %p2213_p2 = scmp.lt.s32.totalorder %s284_s10, %s284_s10 }
  0x6c   : > { %p2206_p0 = scmp.ne.s32.totalorder %s284_s10, %s2205_s22  ;;  %p2214_p4 = scmp.lt.s32.totalorder %s2205_s22, %s2205_s22 }
  0x6e   : > { %p2208_p5 = pnand %p2206_p0, %p2541_p13  ;;  %p2215_p6 = por %p2214_p4, %p2213_p2 }
  0x70   : > { %p2209_p9 = pneg %p2208_p5 }
  0x72   : > { %p2216_p7 = pnand %p2215_p6, %p2209_p9 }
  0x74   : > { %2219 = shalt.err (!%p2216_p7)
}
  0x75   : > { %p3018_p11 = scmp.ne.s32.totalorder %s3006_s18, 0  ;;  %s2417_s8 = smov [#allocation10]  }
  0x76   : > { %s299_s29 = sshll.u32 %s2417_s8, 4  ;;  %s2220_s16 = scalar_lea.hbm %s2968_s5, 2048  ;;  %s300_s29 = int_to_ptr.vmem [resolvable:$true] %s299_s29 }
  0x77   : > { %2010 = dma.hbm_to_vmem [thread:$0]  (!%p3018_p11), %s2966_s3, 2048, %s284_s10, [#allocation7], %s2414_s23, %s2414_s23, %s2415_s1  }
  0x78   : > { %p2221_p7 = scmp.ne.s32.totalorder %s2968_s5, %s2220_s16  ;;  %p2227_p8 = scmp.lt.u32.totalorder %s2220_s16, %s2968_s5 }
  0x7a   : > { %p2223_p10 = pnand %p2221_p7, %p2541_p13 }
  0x7c   : > { %p2224_p1 = pneg %p2223_p10 }
  0x7e   : > { %p2229_p12 = pnand %p2227_p8, %p2224_p1 }
  0x80   : > { %2232 = shalt.err (!%p2229_p12)
}
  0x81   : > { %s2233_s10 = scalar_lea.vmem %s300_s29, 2048  ;;  %p2241_p2 = scmp.lt.s32.totalorder %s300_s29, %s300_s29 }
  0x82   : > { %p2234_p0 = scmp.ne.s32.totalorder %s300_s29, %s2233_s10  ;;  %p2242_p4 = scmp.lt.s32.totalorder %s2233_s10, %s2233_s10 }
  0x84   : > { %p2236_p5 = pnand %p2234_p0, %p2541_p13  ;;  %p2243_p6 = por %p2242_p4, %p2241_p2 }
  0x86   : > { %p2237_p9 = pneg %p2236_p5 }
  0x88   : > { %p2244_p3 = pnand %p2243_p6, %p2237_p9 }
  0x8a   : > { %2247 = shalt.err (!%p2244_p3)
}
  0x8b   : > { %2013 = dma.hbm_to_vmem [thread:$0]  (!%p3018_p11), %s2968_s5, 2048, %s300_s29, [#allocation11], %s2414_s23, %s2414_s23, %s2415_s1  }
  0x8c   : > { %s2248_s25 = scalar_lea.hbm %s2636_s26, 2048  ;;  %p3019_p7 = scmp.ne.s32.totalorder %s3016_s24, 0 }
  0x8d   : > { %p2249_p13 = scmp.ne.s32.totalorder %s2636_s26, %s2248_s25  ;;  %s2253_s7 = scalar_lea.hbm %s2965_s2, 4096 }
  0x8e   : > { %p3020_p10 = pneg %p3019_p7  ;;  %p2254_p8 = scmp.lt.u32.totalorder %s2636_s26, %s2965_s2 }
  0x8f   : > { %p2255_p12 = scmp.lt.u32.totalorder %s2253_s7, %s2248_s25  ;;  %p2257_p5 = scmp.lt.u32.totalorder %s2248_s25, %s2636_s26 }
  0x90   : > { %p2251_p1 = pnand %p2249_p13, %p3020_p10 }
  0x91   : > { %p2256_p0 = por %p2255_p12, %p2254_p8 }
  0x92   : > { %p2252_p3 = pneg %p2251_p1 }
  0x93   : > { %p2258_p9 = por %p2257_p5, %p2256_p0 }
  0x95   : > { %p2259_p2 = pnand %p2258_p9, %p2252_p3 }
  0x97   : > { %2262 = shalt.err (!%p2259_p2)
}
  0x98   : > { %s2263_s29 = scalar_lea.vmem %s2660_s0, 2048  ;;  %p3021_p4 = pmov %p3020_p10 }
  0x99   : > { %p2264_p11 = scmp.ne.s32.totalorder %s2660_s0, %s2263_s29  ;;  %s2418_s12 = smov [#allocation8]  }
  0x9a   : > { %s2268_s16 = sshll.u32 %s2418_s12, 4  ;;  %s2269_s16 = int_to_ptr.vmem [resolvable:$false] %s2268_s16 }
  0x9b   : > { %p2266_p6 = pnand %p2264_p11, %p3021_p4  ;;  %s2270_s14 = scalar_lea.vmem %s2269_s16, 4096 }
  0x9c   : > { %p2271_p10 = scmp.lt.s32.totalorder %s2660_s0, %s2269_s16  ;;  %p2272_p1 = scmp.lt.s32.totalorder %s2270_s14, %s2263_s29 }
  0x9d   : > { %p2267_p13 = pneg %p2266_p6 }
  0x9e   : > { %p2273_p8 = por %p2272_p1, %p2271_p10 }
  0xa0   : > { %p2274_p12 = pnand %p2273_p8, %p2267_p13 }
  0xa2   : > { %2277 = shalt.err (!%p2274_p12)
}
  0xa3   : > { %2020 = dma.hbm_to_vmem [thread:$0]  (!%p3019_p7), %s2636_s26, 2048, %s2660_s0, %s2600_s21, %s2414_s23, %s2414_s23, %s2415_s1  }
  0xa4   : > { %p3022_p3 = scmp.ne.s32.totalorder %s3005_s15, 0 }
  0xa5   : > { %s365_s17 = sand.u32 (!%p3022_p3), 1, %s2500_s11   ;;  %s2714_s20 = sand.u32 (!%p3022_p3), 1, %s2392_s28  }
  0xa6   : > { %363 = sbr.rel (%p3022_p3) target bundleno = 974 (0x3ce), region = 48  ;;  %s2717_s27 = sshll.u32 (!%p3022_p3), %s2714_s20, 7 }
  0xa7   : > { %s366_s24 = scalar_lea.sflag (!%p3022_p3), [#allocation4], %s365_s17  ;;  %s2720_s10 = scalar_lea.vmem (!%p3022_p3), [#allocation3], %s2717_s27 }
  0xa8   : > { %p3023_p0 = scmp.ne.s32.totalorder (!%p3022_p3), %s3002_s13, 0 }
  0xad   : > { %2359 = dma.done.wait (%p3023_p0), %s366_s24, 2048  }
  0xae   : > { %2361 = vsyncadd (%p3023_p0), %s366_s24, 4294965248  ;;  %p3024_p7 = scmp.eq.s32.totalorder %s2500_s11, 0 }
  0xb0   : > { %2363 = dma.done.wait (%p3024_p7), [#allocation7], 2048   ;;  %p3025_p5 = pmov %p3024_p7 }
  0xb1   : > { %s2731_s0 = scalar_lea.vmem [#allocation8], %s2717_s27 }
  0xb2   : > { %2365 = vsyncadd (%p3025_p5), [#allocation7], 4294965248 }
  0xb3   : > { %2367 = dma.done.wait (%p3023_p0), %s366_s24, 2048  }
  0xb4   : > { %2369 = vsyncadd (%p3023_p0), %s366_s24, 4294965248  ;;  %p3026_p9 = pmov %p3025_p5 }
  0xb5   : > { %p3027_p2 = pmov %p3025_p5 }
  0xb6   : > { %2371 = dma.done.wait (%p3026_p9), [#allocation7], 2048  }
  0xb7   : > { %2373 = vsyncadd (%p3027_p2), [#allocation7], 4294965248  ;;  %p3028_p11 = pmov %p3027_p2 }
  0xb8   : > { %p3029_p4 = pmov %p3027_p2 }
  0xb9   : > { %2375 = dma.done.wait (%p3028_p11), [#allocation11], 2048  }
  0xba   : > { %2377 = vsyncadd (%p3029_p4), [#allocation11], 4294965248  ;;  %v2094_v0 = vld [vmem:[#allocation6 + $0x40] sm:$0xff]   ;;  %v2096_v2 = vld [vmem:[#allocation6 + $0x48] sm:$0xff]   ;;  %s3030_s15 = sld [smem:[#allocation24_spill]]  ;;  %s3031_s26 = sld [smem:[#allocation32_spill]] }
  0xbb   : > { %v2095_v1 = vld [vmem:[#allocation6] sm:$0xff]   ;;  %1680 = vmatprep.subr.bf16.mxu0 %v2094_v0  ;;  %v2097_v3 = vld [vmem:[#allocation6 + $0x8] sm:$0xff]   ;;  %v2098_v4 = vld [vmem:[#allocation6 + $0x50] sm:$0xff]   ;;  %s2805_s19 = scalar_lea.vmem [#allocation12], %s2717_s27  ;;  %s3032_s6 = sld [smem:[#allocation28_spill]] }
  0xbc   : > { %1681 = vmatpush3.bf16.msra.mxu0 %v2095_v1  ;;  %v2099_v5 = vld [vmem:[#allocation6 + $0x10] sm:$0xff]   ;;  %v2100_v6 = vld [vmem:[#allocation6 + $0x58] sm:$0xff]   ;;  %v2102_v8 = vld [vmem:[#allocation6 + $0x60] sm:$0xff]   ;;  %s1416_s25 = sshll.u32 %s2805_s19, 4  ;;  %s3033_s8 = sld [smem:[#allocation33_spill]]  ;;  %s2879_s25 = int_to_ptr.vmem [resolvable:$true] %s1416_s25 }
  0xbd   : > { %1682 = vmatprep.subr.bf16.mxu0 %v2096_v2  ;;  %v2101_v7 = vld [vmem:[#allocation6 + $0x18] sm:$0xff]   ;;  %v2103_v9 = vld [vmem:[#allocation6 + $0x20] sm:$0xff]   ;;  %v2104_v10 = vld [vmem:[#allocation6 + $0x68] sm:$0xff]   ;;  %s1398_s29 = scalar_lea.sflag [#allocation5], %s2714_s20  ;;  %s2278_s12 = scalar_lea.vmem %s2879_s25, 2048 }
  0xbe   : > { %v2112_v11 = vld [vmem:[%s2720_s10 + $0x4] ss:$8 sps:$4 sm:$0xff]   ;;  %v2106_v13 = vld [vmem:[#allocation6 + $0x70] sm:$0xff]   ;;  %v2108_v15 = vld [vmem:[#allocation6 + $0x78] sm:$0xff]   ;;  %p2279_p6 = scmp.ne.s32.totalorder %s2879_s25, %s2278_s12  ;;  %s2420_s16 = smov [#allocation12]  }
  0xbf   : > { %v2105_v12 = vld [vmem:[#allocation6 + $0x28] sm:$0xff]   ;;  %834 = vmatprep.mubr.bf16.mxu0 %v2112_v11  ;;  %v2107_v14 = vld [vmem:[#allocation6 + $0x30] sm:$0xff]   ;;  %v2109_v16 = vld [vmem:[#allocation6 + $0x38] sm:$0xff]   ;;  %s2282_s14 = sshll.u32 %s2420_s16, 4  ;;  %s2283_s14 = int_to_ptr.vmem [resolvable:$false] %s2282_s14 }
  0xc0   : > { %1683 = vmatpush3.bf16.msra.mxu0 %v2097_v3  ;;  %v950_v17 = vld [vmem:[#allocation9] sm:$0xff]  ;;  %v951_v18 = vld [vmem:[#allocation9 + $0x8] sm:$0xff]  ;;  %v952_v19 = vld [vmem:[#allocation9 + $0x10] sm:$0xff]  ;;  %s1618_s21 = sshll.u32 %s3030_s15, 7  ;;  %s1679_s22 = sshll.u32 %s3030_s15, 11 }
  0xc1   : > { %1684 = vmatprep.subr.bf16.mxu0 %v2098_v4  ;;  %v953_v20 = vld [vmem:[#allocation9 + $0x18] sm:$0xff]  ;;  %v1920_v21 = vpack.c.bf16 %v951_v18, %v950_v17  ;;  %v954_v23 = vld [vmem:[#allocation9 + $0x20] sm:$0xff]  ;;  %v955_v24 = vld [vmem:[#allocation9 + $0x28] sm:$0xff]  ;;  %p3034_p13 = scmp.ne.s32.totalorder %s3032_s6, 0  ;;  %s2284_s17 = scalar_lea.vmem %s2283_s14, 4096 }
  0xc2   : > { %v1924_v22 = vpack.c.bf16 %v953_v20, %v952_v19  ;;  %v2110_v25 = vld [vmem:[%s2720_s10] ss:$8 sps:$4 sm:$0xff]   ;;  %v2113_v26 = vld [vmem:[%s2720_s10 + $0x14] ss:$8 sps:$4 sm:$0xff]   ;;  %v1928_v27 = vpack.c.bf16 %v955_v24, %v954_v23  ;;  %v2115_v33 = vld [vmem:[%s2720_s10 + $0x10] ss:$8 sps:$4 sm:$0xff]   ;;  %s2877_s30 = scalar_lea.hbm %s3033_s8, %s1679_s22  ;;  %p2285_p8 = scmp.lt.s32.totalorder %s2879_s25, %s2283_s14 }
  0xc3   : > { %1921 = vmatprep.subr.bf16.mxu1 %v1920_v21  ;;  %v956_v28 = vld [vmem:[#allocation9 + $0x30] sm:$0xff]  ;;  %v957_v29 = vld [vmem:[#allocation9 + $0x38] sm:$0xff]  ;;  %v958_v31 = vld [vmem:[#allocation9 + $0x40] sm:$0xff]  ;;  %p2280_p10 = pnand %p2279_p6, %p3034_p13  ;;  %p2286_p12 = scmp.lt.s32.totalorder %s2284_s17, %s2278_s12 }
  0xc4   : > { %1685 = vmatpush3.bf16.msra.mxu0 %v2099_v5  ;;  %1923 = vmatpush3.bf16.msra.mxu1 %v1920_v21  ;;  %v1932_v30 = vpack.c.bf16 %v957_v29, %v956_v28  ;;  %v959_v32 = vld [vmem:[#allocation9 + $0x48] sm:$0xff]  ;;  %v960_v36 = vld [vmem:[#allocation9 + $0x50] sm:$0xff]  ;;  %v961_v37 = vld [vmem:[#allocation9 + $0x58] sm:$0xff] }
  0xc5   : > { %1686 = vmatprep.subr.bf16.mxu0 %v2100_v6  ;;  %1925 = vmatprep.subr.bf16.mxu1 %v1924_v22  ;;  %v2116_v34 = vld [vmem:[%s2720_s10 + $0x24] ss:$8 sps:$4 sm:$0xff]   ;;  %v1936_v35 = vpack.c.bf16 %v959_v32, %v958_v31  ;;  %v1940_v38 = vpack.c.bf16 %v961_v37, %v960_v36  ;;  %v2118_v39 = vld [vmem:[%s2720_s10 + $0x20] ss:$8 sps:$4 sm:$0xff]   ;;  %v2119_v40 = vld [vmem:[%s2720_s10 + $0x34] ss:$8 sps:$4 sm:$0xff]   ;;  %p2281_p1 = pneg %p2280_p10  ;;  %p2287_p3 = por %p2286_p12, %p2285_p8 }
  0xc6   : > { %v2121_v41 = vld [vmem:[%s2720_s10 + $0x30] ss:$8 sps:$4 sm:$0xff]   ;;  %v2122_v42 = vld [vmem:[%s2720_s10 + $0x44] ss:$8 sps:$4 sm:$0xff]   ;;  %v2124_v43 = vld [vmem:[%s2720_s10 + $0x40] ss:$8 sps:$4 sm:$0xff]  }
  0xc7   : > { %v2125_v44 = vld [vmem:[%s2720_s10 + $0x54] ss:$8 sps:$4 sm:$0xff]   ;;  %v2127_v45 = vld [vmem:[%s2720_s10 + $0x50] ss:$8 sps:$4 sm:$0xff]   ;;  %v2128_v46 = vld [vmem:[%s2720_s10 + $0x64] ss:$8 sps:$4 sm:$0xff]   ;;  %p2288_p0 = pnand %p2287_p3, %p2281_p1 }
  0xc8   : > { %1687 = vmatpush3.bf16.msra.mxu0 %v2101_v7  ;;  %1927 = vmatpush3.bf16.msra.mxu1 %v1924_v22  ;;  %v2130_v47 = vld [vmem:[%s2720_s10 + $0x60] ss:$8 sps:$4 sm:$0xff]   ;;  %v2131_v48 = vld [vmem:[%s2720_s10 + $0x74] ss:$8 sps:$4 sm:$0xff]   ;;  %v2133_v49 = vld [vmem:[%s2720_s10 + $0x70] ss:$8 sps:$4 sm:$0xff]  }
  0xc9   : > { %1688 = vmatprep.subr.bf16.mxu0 %v2102_v8  ;;  %1929 = vmatprep.subr.bf16.mxu1 %v1928_v27  ;;  %v962_v50 = vld [vmem:[#allocation9 + $0x60] sm:$0xff]  ;;  %v963_v51 = vld [vmem:[#allocation9 + $0x68] sm:$0xff]  ;;  %v964_v53 = vld [vmem:[#allocation9 + $0x70] sm:$0xff] }
  0xca   : > { %v1944_v52 = vpack.c.bf16 %v963_v51, %v962_v50  ;;  %v965_v54 = vld [vmem:[#allocation9 + $0x78] sm:$0xff]  ;;  %v1134_v56 = vld [vmem:[#allocation10] sm:$0xff]  ;;  %v1135_v57 = vld [vmem:[#allocation10 + $0x8] sm:$0xff] }
  0xcb   : > { %v1948_v55 = vpack.c.bf16 %v965_v54, %v964_v53  ;;  %v1952_v58 = vpack.c.bf16 %v1135_v57, %v1134_v56  ;;  %v525_v61 = vld [vmem:[%s2731_s0] sm:$0xff]  ;;  %v526_v0 = vld [vmem:[%s2731_s0 + $0x8] sm:$0xff]  ;;  %v1136_v2 = vld [vmem:[#allocation10 + $0x10] sm:$0xff] }
  0xcc   : > { %1689 = vmatpush3.bf16.msra.mxu0 %v2103_v9  ;;  %1931 = vmatpush3.bf16.msra.mxu1 %v1928_v27  ;;  %v1137_v3 = vld [vmem:[#allocation10 + $0x18] sm:$0xff]  ;;  %v1138_v8 = vld [vmem:[#allocation10 + $0x20] sm:$0xff]  ;;  %v1139_v9 = vld [vmem:[#allocation10 + $0x28] sm:$0xff] }
  0xcd   : > { %1690 = vmatprep.subr.bf16.mxu0 %v2104_v10  ;;  %1933 = vmatprep.subr.bf16.mxu1 %v1932_v30  ;;  %v1956_v7 = vpack.c.bf16 %v1137_v3, %v1136_v2  ;;  %v527_v11 = vld [vmem:[%s2731_s0 + $0x10] sm:$0xff]  ;;  %v1141_v19 = vld [vmem:[#allocation10 + $0x38] sm:$0xff]  ;;  %v1142_v24 = vld [vmem:[#allocation10 + $0x40] sm:$0xff] }
  0xce   : > { %v1140_v18 = vld [vmem:[#allocation10 + $0x30] sm:$0xff]  ;;  %v529_v27 = vld [vmem:[%s2731_s0 + $0x20] sm:$0xff]  ;;  %v530_v32 = vld [vmem:[%s2731_s0 + $0x28] sm:$0xff] }
  0xcf   : > { %v1964_v23 = vpack.c.bf16 %v1141_v19, %v1140_v18  ;;  %v533_v54 = vld [vmem:[%s2731_s0 + $0x40] sm:$0xff] }
  0xd0   : > { %1691 = vmatpush3.bf16.msra.mxu0 %v2105_v12  ;;  %1935 = vmatpush3.bf16.msra.mxu1 %v1932_v30 }
  0xd1   : > { %1692 = vmatprep.subr.bf16.mxu0 %v2106_v13  ;;  %1937 = vmatprep.subr.bf16.mxu1 %v1936_v35 }
  0xd4   : > { %1693 = vmatpush3.bf16.msra.mxu0 %v2107_v14  ;;  %1939 = vmatpush3.bf16.msra.mxu1 %v1936_v35  ;;  %v1145_v35 = vld [vmem:[#allocation10 + $0x58] sm:$0xff] }
  0xd5   : > { %1694 = vmatprep.subr.bf16.mxu0 %v2108_v15  ;;  %1941 = vmatprep.subr.bf16.mxu1 %v1940_v38  ;;  %v1960_v15 = vpack.c.bf16 %v1139_v9, %v1138_v8 }
  0xd8   : > { %1695 = vmatpush3.bf16.msra.mxu0 %v2109_v16  ;;  %1943 = vmatpush3.bf16.msra.mxu1 %v1940_v38  ;;  %v528_v16 = vld [vmem:[%s2731_s0 + $0x18] sm:$0xff] }
  0xd9   : > { %1945 = vmatprep.subr.bf16.mxu1 %v1944_v52 }
  0xdb   : > { %835 = vmatmul.mubr.bf16.vlgmr.msra.gmra.mrb[0].mxu0 %v2110_v25  ;;  %v1143_v25 = vld [vmem:[#allocation10 + $0x48] sm:$0xff] }
  0xdc   : > { %842 = vmatprep.mubr.bf16.mxu0 %v2113_v26  ;;  %1947 = vmatpush3.bf16.msra.mxu1 %v1944_v52  ;;  %v1968_v31 = vpack.c.bf16 %v1143_v25, %v1142_v24  ;;  %v540_v24 = vld [vmem:[%s2731_s0 + $0x78] sm:$0xff] }
  0xdd   : > { %1949 = vmatprep.subr.bf16.mxu1 %v1948_v55 }
  0xe0   : > { %1951 = vmatpush3.bf16.msra.mxu1 %v1948_v55 }
  0xe1   : > { %1953 = vmatprep.subr.bf16.mxu1 %v1952_v58 }
  0xe3   : > { %843 = vmatmul.mubr.bf16.gmra.mrb[4].mxu0 %v2115_v33 }
  0xe4   : > { %850 = vmatprep.mubr.bf16.mxu0 %v2116_v34  ;;  %v1144_v34 = vld [vmem:[#allocation10 + $0x50] sm:$0xff] }
  0xeb   : > { %851 = vmatmul.mubr.bf16.gmra.mrb[8].mxu0 %v2118_v39  ;;  %v1972_v39 = vpack.c.bf16 %v1145_v35, %v1144_v34 }
  0xec   : > { %858 = vmatprep.mubr.bf16.mxu0 %v2119_v40  ;;  %v1146_v40 = vld [vmem:[#allocation10 + $0x60] sm:$0xff] }
  0xf3   : > { %859 = vmatmul.mubr.bf16.gmra.mrb[12].mxu0 %v2121_v41  ;;  %v1147_v41 = vld [vmem:[#allocation10 + $0x68] sm:$0xff] }
  0xf4   : > { %866 = vmatprep.mubr.bf16.mxu0 %v2122_v42 }
  0xfb   : > { %867 = vmatmul.mubr.bf16.gmra.mrb[16].mxu0 %v2124_v43  ;;  %v531_v43 = vld [vmem:[%s2731_s0 + $0x30] sm:$0xff] }
  0xfc   : > { %874 = vmatprep.mubr.bf16.mxu0 %v2125_v44 }
 0x103   : > { %875 = vmatmul.mubr.bf16.gmra.mrb[20].mxu0 %v2127_v45 }
 0x104   : > { %882 = vmatprep.mubr.bf16.mxu0 %v2128_v46 }
 0x10b   : > { %883 = vmatmul.mubr.bf16.gmra.mrb[24].mxu0 %v2130_v47  ;;  %v1976_v47 = vpack.c.bf16 %v1147_v41, %v1146_v40 }
 0x10c   : > { %890 = vmatprep.mubr.bf16.mxu0 %v2131_v48  ;;  %v532_v48 = vld [vmem:[%s2731_s0 + $0x38] sm:$0xff] }
 0x113   : > { %891 = vmatmul.mubr.bf16.gmra.mrb[28].mxu0 %v2133_v49 }
 0x1ae   : > { %v1696_v59 = vpop.f32.mrb[0].mxu0 }
 0x1af   : > { %v1697_v60 = vpop.f32.mrb[1].mxu0 }
 0x1b0   : > { %v1698_v62 = vadd.f32 %v1697_v60, %v1696_v59  ;;  %v1699_v63 = vpop.f32.mrb[2].mxu0 }
 0x1b1   : > { %v1700_v1 = vpop.f32.mrb[3].mxu0 }
 0x1b2   : > { %v1701_v4 = vadd.f32 %v1700_v1, %v1699_v63  ;;  %v899_v5 = vadd.f32 %v1698_v62, %v525_v61 }
 0x1b4   : > { %v900_v6 = vadd.f32 %v1701_v4, %v526_v0  ;;  %1840 = vmatprep.mubr.f32.mxu1 %v899_v5  ;;  %v535_v0 = vld [vmem:[%s2731_s0 + $0x50] sm:$0xff]  ;;  %v536_v4 = vld [vmem:[%s2731_s0 + $0x58] sm:$0xff] }
 0x1b6   : > { %v1702_v10 = vpop.f32.mrb[4].mxu0  ;;  %1841 = vmatmul.mubr.f32.vlgmr.msra.gmra.mrb[0].mxu1 %v900_v6 }
 0x1b7   : > { %v1703_v12 = vpop.f32.mrb[5].mxu0  ;;  %1955 = vmatpush3.bf16.msra.mxu1 %v1952_v58  ;;  %v534_v58 = vld [vmem:[%s2731_s0 + $0x48] sm:$0xff] }
 0x1b8   : > { %v1704_v13 = vadd.f32 %v1703_v12, %v1702_v10  ;;  %v1705_v14 = vpop.f32.mrb[6].mxu0  ;;  %1957 = vmatprep.subr.bf16.mxu1 %v1956_v7  ;;  %v537_v10 = vld [vmem:[%s2731_s0 + $0x60] sm:$0xff] }
 0x1b9   : > { %v1706_v17 = vpop.f32.mrb[7].mxu0 }
 0x1ba   : > { %v901_v20 = vadd.f32 %v1704_v13, %v527_v11  ;;  %v1707_v21 = vadd.f32 %v1706_v17, %v1705_v14  ;;  %v538_v14 = vld [vmem:[%s2731_s0 + $0x68] sm:$0xff] }
 0x1bb   : > { %1959 = vmatpush3.bf16.msra.mxu1 %v1956_v7 }
 0x1bc   : > { %v902_v22 = vadd.f32 %v1707_v21, %v528_v16  ;;  %1843 = vmatprep.mubr.f32.mxu1 %v901_v20  ;;  %1961 = vmatprep.subr.bf16.mxu1 %v1960_v15  ;;  %v539_v20 = vld [vmem:[%s2731_s0 + $0x70] sm:$0xff] }
 0x1be   : > { %v1708_v26 = vpop.f32.mrb[8].mxu0  ;;  %1844 = vmatmul.mubr.f32.gmra.mrb[2].mxu1 %v902_v22 }
 0x1bf   : > { %v1709_v28 = vpop.f32.mrb[9].mxu0  ;;  %1963 = vmatpush3.bf16.msra.mxu1 %v1960_v15 }
 0x1c0   : > { %v1710_v29 = vadd.f32 %v1709_v28, %v1708_v26  ;;  %v1711_v30 = vpop.f32.mrb[10].mxu0  ;;  %1965 = vmatprep.subr.bf16.mxu1 %v1964_v23 }
 0x1c1   : > { %v1712_v33 = vpop.f32.mrb[11].mxu0 }
 0x1c2   : > { %v903_v36 = vadd.f32 %v1710_v29, %v529_v27  ;;  %v1713_v37 = vadd.f32 %v1712_v33, %v1711_v30  ;;  %v1148_v29 = vld [vmem:[#allocation10 + $0x70] sm:$0xff]  ;;  %v1149_v30 = vld [vmem:[#allocation10 + $0x78] sm:$0xff] }
 0x1c3   : > { %1967 = vmatpush3.bf16.msra.mxu1 %v1964_v23 }
 0x1c4   : > { %v904_v38 = vadd.f32 %v1713_v37, %v530_v32  ;;  %1846 = vmatprep.mubr.f32.mxu1 %v903_v36  ;;  %1969 = vmatprep.subr.bf16.mxu1 %v1968_v31  ;;  %v1667_v32 = vld [vmem:[%s2967_s4] ss:$0 sm:$0xff] }
 0x1c6   : > { %v1714_v42 = vpop.f32.mrb[12].mxu0  ;;  %1847 = vmatmul.mubr.f32.gmra.mrb[4].mxu1 %v904_v38 }
 0x1c7   : > { %v1715_v44 = vpop.f32.mrb[13].mxu0  ;;  %1971 = vmatpush3.bf16.msra.mxu1 %v1968_v31  ;;  %v1980_v31 = vpack.c.bf16 %v1149_v30, %v1148_v29 }
 0x1c8   : > { %v1716_v45 = vadd.f32 %v1715_v44, %v1714_v42  ;;  %v1717_v46 = vpop.f32.mrb[14].mxu0  ;;  %1973 = vmatprep.subr.bf16.mxu1 %v1972_v39 }
 0x1c9   : > { %v1718_v49 = vpop.f32.mrb[15].mxu0 }
 0x1ca   : > { %v905_v50 = vadd.f32 %v1716_v45, %v531_v43  ;;  %v1719_v51 = vadd.f32 %v1718_v49, %v1717_v46 }
 0x1cb   : > { %1975 = vmatpush3.bf16.msra.mxu1 %v1972_v39 }
 0x1cc   : > { %v906_v52 = vadd.f32 %v1719_v51, %v532_v48  ;;  %1849 = vmatprep.mubr.f32.mxu1 %v905_v50  ;;  %1977 = vmatprep.subr.bf16.mxu1 %v1976_v47 }
 0x1ce   : > { %v1720_v53 = vpop.f32.mrb[16].mxu0  ;;  %1850 = vmatmul.mubr.f32.gmra.mrb[6].mxu1 %v906_v52 }
 0x1cf   : > { %v1721_v55 = vpop.f32.mrb[17].mxu0  ;;  %1979 = vmatpush3.bf16.msra.mxu1 %v1976_v47 }
 0x1d0   : > { %v1722_v56 = vadd.f32 %v1721_v55, %v1720_v53  ;;  %v1723_v57 = vpop.f32.mrb[18].mxu0  ;;  %1981 = vmatprep.subr.bf16.mxu1 %v1980_v31 }
 0x1d1   : > { %v1724_v59 = vpop.f32.mrb[19].mxu0 }
 0x1d2   : > { %v907_v60 = vadd.f32 %v1722_v56, %v533_v54  ;;  %v1725_v61 = vadd.f32 %v1724_v59, %v1723_v57 }
 0x1d3   : > { %1983 = vmatpush3.bf16.msra.mxu1 %v1980_v31 }
 0x1d4   : > { %v908_v62 = vadd.f32 %v1725_v61, %v534_v58  ;;  %1852 = vmatprep.mubr.f32.mxu1 %v907_v60 }
 0x1d6   : > { %v1726_v63 = vpop.f32.mrb[20].mxu0  ;;  %1853 = vmatmul.mubr.f32.gmra.mrb[8].mxu1 %v908_v62 }
 0x1d7   : > { %v1727_v1 = vpop.f32.mrb[21].mxu0 }
 0x1d8   : > { %v1728_v2 = vadd.f32 %v1727_v1, %v1726_v63  ;;  %v1729_v3 = vpop.f32.mrb[22].mxu0 }
 0x1d9   : > { %v1730_v5 = vpop.f32.mrb[23].mxu0 }
 0x1da   : > { %v909_v6 = vadd.f32 %v1728_v2, %v535_v0  ;;  %v1731_v7 = vadd.f32 %v1730_v5, %v1729_v3 }
 0x1dc   : > { %v910_v8 = vadd.f32 %v1731_v7, %v536_v4  ;;  %1855 = vmatprep.mubr.f32.mxu1 %v909_v6 }
 0x1de   : > { %v1732_v9 = vpop.f32.mrb[24].mxu0  ;;  %1856 = vmatmul.mubr.f32.gmra.mrb[10].mxu1 %v910_v8 }
 0x1df   : > { %v1733_v11 = vpop.f32.mrb[25].mxu0 }
 0x1e0   : > { %v1734_v12 = vadd.f32 %v1733_v11, %v1732_v9  ;;  %v1735_v13 = vpop.f32.mrb[26].mxu0 }
 0x1e1   : > { %v1736_v15 = vpop.f32.mrb[27].mxu0 }
 0x1e2   : > { %v911_v16 = vadd.f32 %v1734_v12, %v537_v10  ;;  %v1737_v17 = vadd.f32 %v1736_v15, %v1735_v13 }
 0x1e4   : > { %v912_v18 = vadd.f32 %v1737_v17, %v538_v14  ;;  %1858 = vmatprep.mubr.f32.mxu1 %v911_v16  ;;  %v439_v17 = vlaneseq }
 0x1e6   : > { %v1738_v19 = vpop.f32.mrb[28].mxu0  ;;  %1859 = vmatmul.mubr.f32.gmra.mrb[12].mxu1 %v912_v18  ;;  %v2780_v18 = vshrl.u32 %v439_v17, 7 }
 0x1e7   : > { %v1739_v21 = vpop.f32.mrb[29].mxu0 }
 0x1e8   : > { %v1740_v22 = vadd.f32 %v1739_v21, %v1738_v19  ;;  %v1741_v23 = vpop.f32.mrb[30].mxu0  ;;  %v441_v19 = vadd.s32 8, %v2780_v18 }
 0x1e9   : > { %v1742_v25 = vpop.f32.mrb[31].mxu0 }
 0x1ea   : > { %v913_v26 = vadd.f32 %v1740_v22, %v539_v20  ;;  %v1743_v27 = vadd.f32 %v1742_v25, %v1741_v23  ;;  %v2786_v20 = vstv %s1618_s21  ;;  %v443_v23 = vadd.s32 24, %v2780_v18 }
 0x1eb   : > { %v458_v21 = vadd.s32 %v2786_v20, %v441_v19  ;;  %v457_v22 = vadd.s32 %v2786_v20, %v2780_v18  ;;  %v442_v25 = vadd.s32 16, %v2780_v18 }
 0x1ec   : > { %v914_v28 = vadd.f32 %v1743_v27, %v540_v24  ;;  %1861 = vmatprep.mubr.f32.mxu1 %v913_v26  ;;  %v2795_v24 = vld [vmem:[%s3031_s26] ss:$0 sm:$0xff]  ;;  %v2419_v26 = vmov 0.0  }
 0x1ed   : > { %vm474_vm0 = vcmp.lt.s32.totalorder %v458_v21, 16  ;;  %vm473_vm1 = vcmp.lt.s32.totalorder %v457_v22, 16 }
 0x1ee   : > { %1862 = vmatmul.mubr.f32.gmra.mrb[14].mxu1 %v914_v28  ;;  %v1620_v27 = vsel %vm474_vm0, 1.0, %v2419_v26  ;;  %v1619_v30 = vsel %vm473_vm1, 1.0, %v2419_v26 }
 0x289   : > { %v1842_v33 = vpop.f32.mrb[0].mxu1 }
 0x28a   : > { %v1045_v34 = vadd.f32 %v1842_v33, %v1667_v32  ;;  %v1039_v35 = vpop.f32.mrb[1].mxu1 }
 0x28b   : > { %v1040_v36 = vadd.f32 %v1667_v32, %v1039_v35 }
 0x28c   : > { %v1119_v38 = vmax.f32 %v1045_v34, 0.0  ;;  %v459_v34 = vadd.s32 %v2786_v20, %v442_v25 }
 0x28d   : > { %v1118_v37 = vmax.f32 %v1040_v36, 0.0 }
 0x28e   : > { %vm475_vm3 = vcmp.lt.s32.totalorder %v459_v34, 16 }
 0x28f   : > { %1896 = vmatprep.mubr.f32.mxu1 %v1118_v37 }
 0x290   : > { %1897 = vmatmul.mubr.f32.vlgmr.msra.gmra.mrb[16].mxu1 %v1119_v38  ;;  %v445_v38 = vadd.s32 40, %v2780_v18 }
 0x291   : > { %v1845_v39 = vpop.f32.mrb[2].mxu1 }
 0x292   : > { %v1055_v40 = vadd.f32 %v1845_v39, %v1667_v32  ;;  %v1049_v41 = vpop.f32.mrb[3].mxu1 }
 0x293   : > { %v1050_v42 = vadd.f32 %v1667_v32, %v1049_v41  ;;  %v444_v41 = vadd.s32 32, %v2780_v18 }
 0x294   : > { %v1121_v44 = vmax.f32 %v1055_v40, 0.0 }
 0x295   : > { %v1120_v43 = vmax.f32 %v1050_v42, 0.0 }
 0x297   : > { %1899 = vmatprep.mubr.f32.mxu1 %v1120_v43 }
 0x298   : > { %1900 = vmatmul.mubr.f32.gmra.mrb[18].mxu1 %v1121_v44 }
 0x299   : > { %v1848_v45 = vpop.f32.mrb[4].mxu1 }
 0x29a   : > { %v1065_v46 = vadd.f32 %v1848_v45, %v1667_v32  ;;  %v1059_v47 = vpop.f32.mrb[5].mxu1 }
 0x29b   : > { %v1060_v48 = vadd.f32 %v1667_v32, %v1059_v47 }
 0x29c   : > { %v1123_v50 = vmax.f32 %v1065_v46, 0.0  ;;  %v1621_v46 = vsel %vm475_vm3, 1.0, %v2419_v26 }
 0x29d   : > { %v1122_v49 = vmax.f32 %v1060_v48, 0.0  ;;  %v462_v48 = vadd.s32 %v2786_v20, %v445_v38 }
 0x29f   : > { %1902 = vmatprep.mubr.f32.mxu1 %v1122_v49  ;;  %vm478_vm4 = vcmp.lt.s32.totalorder %v462_v48, 16  ;;  %v452_v48 = vadd.s32 96, %v2780_v18 }
 0x2a0   : > { %1903 = vmatmul.mubr.f32.gmra.mrb[20].mxu1 %v1123_v50  ;;  %v461_v50 = vadd.s32 %v2786_v20, %v444_v41 }
 0x2a1   : > { %v1851_v51 = vpop.f32.mrb[6].mxu1 }
 0x2a2   : > { %v1075_v52 = vadd.f32 %v1851_v51, %v1667_v32  ;;  %v1069_v53 = vpop.f32.mrb[7].mxu1  ;;  %vm477_vm5 = vcmp.lt.s32.totalorder %v461_v50, 16 }
 0x2a3   : > { %v1070_v54 = vadd.f32 %v1667_v32, %v1069_v53  ;;  %v447_v53 = vadd.s32 56, %v2780_v18 }
 0x2a4   : > { %v1125_v56 = vmax.f32 %v1075_v52, 0.0 }
 0x2a5   : > { %v1124_v55 = vmax.f32 %v1070_v54, 0.0 }
 0x2a7   : > { %1905 = vmatprep.mubr.f32.mxu1 %v1124_v55 }
 0x2a8   : > { %1906 = vmatmul.mubr.f32.gmra.mrb[22].mxu1 %v1125_v56  ;;  %v446_v56 = vadd.s32 48, %v2780_v18 }
 0x2a9   : > { %v1854_v57 = vpop.f32.mrb[8].mxu1 }
 0x2aa   : > { %v1085_v58 = vadd.f32 %v1854_v57, %v1667_v32  ;;  %v1079_v59 = vpop.f32.mrb[9].mxu1 }
 0x2ab   : > { %v1080_v60 = vadd.f32 %v1667_v32, %v1079_v59 }
 0x2ac   : > { %v1127_v62 = vmax.f32 %v1085_v58, 0.0 }
 0x2ad   : > { %v1126_v61 = vmax.f32 %v1080_v60, 0.0 }
 0x2af   : > { %1908 = vmatprep.mubr.f32.mxu1 %v1126_v61  ;;  %v1624_v61 = vsel %vm478_vm4, 1.0, %v2419_v26 }
 0x2b0   : > { %1909 = vmatmul.mubr.f32.gmra.mrb[24].mxu1 %v1127_v62 }
 0x2b1   : > { %v1857_v63 = vpop.f32.mrb[10].mxu1 }
 0x2b2   : > { %v1095_v0 = vadd.f32 %v1857_v63, %v1667_v32  ;;  %v1089_v1 = vpop.f32.mrb[11].mxu1  ;;  %v1623_v63 = vsel %vm477_vm5, 1.0, %v2419_v26 }
 0x2b3   : > { %v1090_v2 = vadd.f32 %v1667_v32, %v1089_v1  ;;  %v464_v1 = vadd.s32 %v2786_v20, %v447_v53 }
 0x2b4   : > { %v1129_v4 = vmax.f32 %v1095_v0, 0.0 }
 0x2b5   : > { %v1128_v3 = vmax.f32 %v1090_v2, 0.0  ;;  %vm480_vm6 = vcmp.lt.s32.totalorder %v464_v1, 16 }
 0x2b7   : > { %1911 = vmatprep.mubr.f32.mxu1 %v1128_v3 }
 0x2b8   : > { %1912 = vmatmul.mubr.f32.gmra.mrb[26].mxu1 %v1129_v4  ;;  %v463_v4 = vadd.s32 %v2786_v20, %v446_v56 }
 0x2b9   : > { %v1860_v5 = vpop.f32.mrb[12].mxu1 }
 0x2ba   : > { %v1105_v6 = vadd.f32 %v1860_v5, %v1667_v32  ;;  %v1099_v7 = vpop.f32.mrb[13].mxu1  ;;  %vm479_vm7 = vcmp.lt.s32.totalorder %v463_v4, 16  ;;  %v454_v4 = vadd.s32 112, %v2780_v18 }
 0x2bb   : > { %v1100_v8 = vadd.f32 %v1667_v32, %v1099_v7  ;;  %v449_v7 = vadd.s32 72, %v2780_v18  ;;  %v1625_v17 = vsel %vm479_vm7, 1.0, %v2419_v26 }
 0x2bc   : > { %v1131_v10 = vmax.f32 %v1105_v6, 0.0 }
 0x2bd   : > { %v1130_v9 = vmax.f32 %v1100_v8, 0.0  ;;  %v466_v21 = vadd.s32 %v2786_v20, %v449_v7 }
 0x2bf   : > { %1914 = vmatprep.mubr.f32.mxu1 %v1130_v9  ;;  %vm482_vm8 = vcmp.lt.s32.totalorder %v466_v21, 16 }
 0x2c0   : > { %1915 = vmatmul.mubr.f32.gmra.mrb[28].mxu1 %v1131_v10  ;;  %v448_v10 = vadd.s32 64, %v2780_v18 }
 0x2c1   : > { %v1863_v11 = vpop.f32.mrb[14].mxu1 }
 0x2c2   : > { %v1115_v12 = vadd.f32 %v1863_v11, %v1667_v32  ;;  %v1109_v13 = vpop.f32.mrb[15].mxu1  ;;  %v465_v25 = vadd.s32 %v2786_v20, %v448_v10 }
 0x2c3   : > { %v1110_v14 = vadd.f32 %v1667_v32, %v1109_v13  ;;  %v460_v32 = vadd.s32 %v2786_v20, %v443_v23 }
 0x2c4   : > { %v1133_v16 = vmax.f32 %v1115_v12, 0.0  ;;  %vm481_vm9 = vcmp.lt.s32.totalorder %v465_v25, 16 }
 0x2c5   : > { %v1132_v15 = vmax.f32 %v1110_v14, 0.0  ;;  %vm476_vm2 = vcmp.lt.s32.totalorder %v460_v32, 16  ;;  %v450_v32 = vadd.s32 80, %v2780_v18 }
 0x2c6   : > { %v1622_v44 = vsel %vm476_vm2, 1.0, %v2419_v26 }
 0x2c7   : > { %1917 = vmatprep.mubr.f32.mxu1 %v1132_v15  ;;  %v1626_v15 = vsel %vm480_vm6, 1.0, %v2419_v26 }
 0x2c8   : > { %1918 = vmatmul.mubr.f32.gmra.mrb[30].mxu1 %v1133_v16 }
 0x363   : > { %v1898_v28 = vpop.f32.mrb[16].mxu1 }
 0x364   : > { %v1229_v29 = vadd.f32 %v1898_v28, %v2795_v24  ;;  %v1223_v31 = vpop.f32.mrb[17].mxu1 }
 0x365   : > { %v1224_v33 = vadd.f32 %v2795_v24, %v1223_v31 }
 0x366   : > { %1303 = vst [vmem:[%s2805_s19 + $0x8] sm:$0xff] %v1229_v29  ;;  %v1319_v35 = vmul.f32 %v1620_v27, %v1229_v29 }
 0x367   : > { %1302 = vst [vmem:[%s2805_s19] sm:$0xff] %v1224_v33  ;;  %v1318_v36 = vmul.f32 %v1619_v30, %v1224_v33 }
 0x368   : > { %v1356_v37 = vmul.f32 %v1319_v35, %v1229_v29  ;;  %v451_v29 = vadd.s32 88, %v2780_v18 }
 0x369   : > { %v1334_v39 = vadd.f32 %v1319_v35, %v1318_v36  ;;  %v1355_v40 = vmul.f32 %v1318_v36, %v1224_v33 }
 0x36a   : > { %v468_v41 = vadd.s32 %v2786_v20, %v451_v29 }
 0x36b   : > { %v1371_v42 = vadd.f32 %v1356_v37, %v1355_v40  ;;  %v1901_v43 = vpop.f32.mrb[18].mxu1  ;;  %v1628_v37 = vsel %vm482_vm8, 1.0, %v2419_v26 }
 0x36c   : > { %v1239_v45 = vadd.f32 %v1901_v43, %v2795_v24  ;;  %v1233_v47 = vpop.f32.mrb[19].mxu1  ;;  %vm484_vm10 = vcmp.lt.s32.totalorder %v468_v41, 16 }
 0x36d   : > { %v1234_v49 = vadd.f32 %v2795_v24, %v1233_v47  ;;  %v453_v47 = vadd.s32 104, %v2780_v18  ;;  %v1630_v53 = vsel %vm484_vm10, 1.0, %v2419_v26 }
 0x36e   : > { %1305 = vst [vmem:[%s2805_s19 + $0x18] sm:$0xff] %v1239_v45  ;;  %v1321_v51 = vmul.f32 %v1622_v44, %v1239_v45  ;;  %v467_v44 = vadd.s32 %v2786_v20, %v450_v32 }
 0x36f   : > { %1304 = vst [vmem:[%s2805_s19 + $0x10] sm:$0xff] %v1234_v49  ;;  %v1320_v52 = vmul.f32 %v1621_v46, %v1234_v49 }
 0x370   : > { %v1358_v57 = vmul.f32 %v1321_v51, %v1239_v45  ;;  %vm483_vm11 = vcmp.lt.s32.totalorder %v467_v44, 16 }
 0x371   : > { %v1335_v54 = vadd.f32 %v1334_v39, %v1320_v52  ;;  %v1357_v55 = vmul.f32 %v1320_v52, %v1234_v49  ;;  %v1627_v39 = vsel %vm481_vm9, 1.0, %v2419_v26 }
 0x373   : > { %v1372_v58 = vadd.f32 %v1371_v42, %v1357_v55  ;;  %v1904_v59 = vpop.f32.mrb[20].mxu1  ;;  %v1336_v60 = vadd.f32 %v1335_v54, %v1321_v51 }
 0x374   : > { %v1249_v62 = vadd.f32 %v1904_v59, %v2795_v24  ;;  %v1243_v0 = vpop.f32.mrb[21].mxu1  ;;  %v470_v59 = vadd.s32 %v2786_v20, %v453_v47 }
 0x375   : > { %v1244_v2 = vadd.f32 %v2795_v24, %v1243_v0  ;;  %v1373_v3 = vadd.f32 %v1372_v58, %v1358_v57  ;;  %v1629_v57 = vsel %vm483_vm11, 1.0, %v2419_v26 }
 0x376   : > { %1307 = vst [vmem:[%s2805_s19 + $0x28] sm:$0xff] %v1249_v62  ;;  %v1323_v5 = vmul.f32 %v1624_v61, %v1249_v62  ;;  %vm486_vm12 = vcmp.lt.s32.totalorder %v470_v59, 16 }
 0x377   : > { %1306 = vst [vmem:[%s2805_s19 + $0x20] sm:$0xff] %v1244_v2  ;;  %v1322_v6 = vmul.f32 %v1623_v63, %v1244_v2 }
 0x378   : > { %v1360_v11 = vmul.f32 %v1323_v5, %v1249_v62 }
 0x379   : > { %v1337_v8 = vadd.f32 %v1336_v60, %v1322_v6  ;;  %v1359_v9 = vmul.f32 %v1322_v6, %v1244_v2  ;;  %v469_v60 = vadd.s32 %v2786_v20, %v452_v48 }
 0x37b   : > { %v1374_v12 = vadd.f32 %v1373_v3, %v1359_v9  ;;  %v1907_v13 = vpop.f32.mrb[22].mxu1  ;;  %v1338_v14 = vadd.f32 %v1337_v8, %v1323_v5  ;;  %vm485_vm13 = vcmp.lt.s32.totalorder %v469_v60, 16  ;;  %v455_v3 = vadd.s32 120, %v2780_v18 }
 0x37c   : > { %v1259_v16 = vadd.f32 %v1907_v13, %v2795_v24  ;;  %v1253_v19 = vpop.f32.mrb[23].mxu1  ;;  %v1632_v9 = vsel %vm486_vm12, 1.0, %v2419_v26  ;;  %v471_v18 = vadd.s32 %v2786_v20, %v454_v4 }
 0x37d   : > { %v1254_v22 = vadd.f32 %v2795_v24, %v1253_v19  ;;  %v1375_v23 = vadd.f32 %v1374_v12, %v1360_v11  ;;  %v1631_v11 = vsel %vm485_vm13, 1.0, %v2419_v26 }
 0x37e   : > { %1309 = vst [vmem:[%s2805_s19 + $0x38] sm:$0xff] %v1259_v16  ;;  %v1325_v27 = vmul.f32 %v1626_v15, %v1259_v16  ;;  %v472_v15 = vadd.s32 %v2786_v20, %v455_v3  ;;  %vm487_vm15 = vcmp.lt.s32.totalorder %v471_v18, 16 }
 0x37f   : > { %1308 = vst [vmem:[%s2805_s19 + $0x30] sm:$0xff] %v1254_v22  ;;  %v1324_v28 = vmul.f32 %v1625_v17, %v1254_v22  ;;  %v1633_v29 = vsel %vm487_vm15, 1.0, %v2419_v26 }
 0x380   : > { %v1362_v33 = vmul.f32 %v1325_v27, %v1259_v16  ;;  %vm488_vm14 = vcmp.lt.s32.totalorder %v472_v15, 16 }
 0x381   : > { %v1339_v30 = vadd.f32 %v1338_v14, %v1324_v28  ;;  %v1361_v31 = vmul.f32 %v1324_v28, %v1254_v22  ;;  %v1634_v20 = vsel %vm488_vm14, 1.0, %v2419_v26 }
 0x383   : > { %v1376_v34 = vadd.f32 %v1375_v23, %v1361_v31  ;;  %v1910_v35 = vpop.f32.mrb[24].mxu1  ;;  %v1340_v36 = vadd.f32 %v1339_v30, %v1325_v27 }
 0x384   : > { %v1269_v38 = vadd.f32 %v1910_v35, %v2795_v24  ;;  %v1263_v40 = vpop.f32.mrb[25].mxu1 }
 0x385   : > { %v1264_v42 = vadd.f32 %v2795_v24, %v1263_v40  ;;  %v1377_v43 = vadd.f32 %v1376_v34, %v1362_v33 }
 0x386   : > { %1311 = vst [vmem:[%s2805_s19 + $0x48] sm:$0xff] %v1269_v38  ;;  %v1327_v45 = vmul.f32 %v1628_v37, %v1269_v38 }
 0x387   : > { %1310 = vst [vmem:[%s2805_s19 + $0x40] sm:$0xff] %v1264_v42  ;;  %v1326_v46 = vmul.f32 %v1627_v39, %v1264_v42 }
 0x388   : > { %v1364_v51 = vmul.f32 %v1327_v45, %v1269_v38 }
 0x389   : > { %v1341_v49 = vadd.f32 %v1340_v36, %v1326_v46  ;;  %v1363_v50 = vmul.f32 %v1326_v46, %v1264_v42 }
 0x38b   : > { %v1378_v52 = vadd.f32 %v1377_v43, %v1363_v50  ;;  %v1913_v54 = vpop.f32.mrb[26].mxu1  ;;  %v1342_v55 = vadd.f32 %v1341_v49, %v1327_v45 }
 0x38c   : > { %v1279_v56 = vadd.f32 %v1913_v54, %v2795_v24  ;;  %v1273_v58 = vpop.f32.mrb[27].mxu1 }
 0x38d   : > { %v1274_v61 = vadd.f32 %v2795_v24, %v1273_v58  ;;  %v1379_v62 = vadd.f32 %v1378_v52, %v1364_v51 }
 0x38e   : > { %1313 = vst [vmem:[%s2805_s19 + $0x58] sm:$0xff] %v1279_v56  ;;  %v1329_v63 = vmul.f32 %v1630_v53, %v1279_v56 }
 0x38f   : > { %1312 = vst [vmem:[%s2805_s19 + $0x50] sm:$0xff] %v1274_v61  ;;  %v1328_v0 = vmul.f32 %v1629_v57, %v1274_v61 }
 0x390   : > { %v1366_v5 = vmul.f32 %v1329_v63, %v1279_v56 }
 0x391   : > { %v1343_v1 = vadd.f32 %v1342_v55, %v1328_v0  ;;  %v1365_v2 = vmul.f32 %v1328_v0, %v1274_v61 }
 0x393   : > { %v1380_v6 = vadd.f32 %v1379_v62, %v1365_v2  ;;  %v1916_v7 = vpop.f32.mrb[28].mxu1  ;;  %v1344_v8 = vadd.f32 %v1343_v1, %v1329_v63 }
 0x394   : > { %v1289_v10 = vadd.f32 %v1916_v7, %v2795_v24  ;;  %v1283_v12 = vpop.f32.mrb[29].mxu1 }
 0x395   : > { %v1284_v13 = vadd.f32 %v2795_v24, %v1283_v12  ;;  %v1381_v14 = vadd.f32 %v1380_v6, %v1366_v5 }
 0x396   : > { %1315 = vst [vmem:[%s2805_s19 + $0x68] sm:$0xff] %v1289_v10  ;;  %v1331_v16 = vmul.f32 %v1632_v9, %v1289_v10 }
 0x397   : > { %1314 = vst [vmem:[%s2805_s19 + $0x60] sm:$0xff] %v1284_v13  ;;  %v1330_v17 = vmul.f32 %v1631_v11, %v1284_v13 }
 0x398   : > { %v1368_v22 = vmul.f32 %v1331_v16, %v1289_v10 }
 0x399   : > { %v1345_v19 = vadd.f32 %v1344_v8, %v1330_v17  ;;  %v1367_v21 = vmul.f32 %v1330_v17, %v1284_v13 }
 0x39b   : > { %v1382_v23 = vadd.f32 %v1381_v14, %v1367_v21  ;;  %v1919_v25 = vpop.f32.mrb[30].mxu1  ;;  %v1346_v27 = vadd.f32 %v1345_v19, %v1331_v16 }
 0x39c   : > { %v1299_v28 = vadd.f32 %v1919_v25, %v2795_v24  ;;  %v1293_v30 = vpop.f32.mrb[31].mxu1 }
 0x39d   : > { %v1294_v31 = vadd.f32 %v2795_v24, %v1293_v30  ;;  %v1383_v32 = vadd.f32 %v1382_v23, %v1368_v22 }
 0x39e   : > { %1317 = vst [vmem:[%s2805_s19 + $0x78] sm:$0xff] %v1299_v28  ;;  %v1333_v33 = vmul.f32 %v1634_v20, %v1299_v28 }
 0x39f   : > { %1316 = vst [vmem:[%s2805_s19 + $0x70] sm:$0xff] %v1294_v31  ;;  %v1332_v34 = vmul.f32 %v1633_v29, %v1294_v31 }
 0x3a0   : > { %2291 = shalt.err (!%p2288_p0)
}
 0x3a1   : > { %s2292_s27 = scalar_lea.hbm %s2877_s30, 2048  ;;  %s2296_s0 = scalar_lea.hbm %s3033_s8, 4096 }
 0x3a2   : > { %p2293_p7 = scmp.ne.s32.totalorder %s2877_s30, %s2292_s27  ;;  %p2297_p2 = scmp.lt.u32.totalorder %s2877_s30, %s3033_s8 }
 0x3a3   : > { %p2298_p11 = scmp.lt.u32.totalorder %s2296_s0, %s2292_s27  ;;  %p2300_p6 = scmp.lt.u32.totalorder %s2292_s27, %s2877_s30 }
 0x3a4   : > { %p2294_p5 = pnand %p2293_p7, %p3034_p13 }
 0x3a5   : > { %p2299_p4 = por %p2298_p11, %p2297_p2 }
 0x3a6   : > { %p2295_p9 = pneg %p2294_p5 }
 0x3a7   : > { %p2301_p10 = por %p2300_p6, %p2299_p4 }
 0x3a9   : > { %p2302_p1 = pnand %p2301_p10, %p2295_p9 }
 0x3ab   : > { %2305 = shalt.err (!%p2302_p1)
}
 0x3ac   : > { %s2421_s23 = smov 128   ;;  %s2422_s1 = smov 8   ;;  %v1347_v24 = vadd.f32 %v1346_v27, %v1332_v34  ;;  %v1369_v26 = vmul.f32 %v1332_v34, %v1294_v31  ;;  %v1370_v35 = vmul.f32 %v1333_v33, %v1299_v28  ;;  %vm1392_vm0 = vcmask 1040384  }
 0x3ad   : > { %2000 = dma.vmem_to_hbm [thread:$0]  (%p3034_p13), %s2879_s25, 2048, %s2877_s30, %s1398_s29, %s2421_s23, %s2421_s23, %s2422_s1   ;;  %vm1394_vm1 = vcmask 1041408  }
 0x3ae   : > { %v1348_v36 = vadd.f32 %v1347_v24, %v1333_v33  ;;  %v1384_v37 = vadd.f32 %v1383_v32, %v1369_v26  ;;  %s1617_s26 = sshll.u32 %s2714_s20, 3  ;;  %s3035_s7 = sld [smem:[#allocation34_spill]] }
 0x3af   : > { %s432_s19 = scalar_lea.vmem [#allocation13], %s1617_s26  ;;  %s1403_s29 = scalar_lea.sflag [#allocation14], %s2714_s20 }
 0x3b0   : > { %v1349_v38 = vrot.slane %v1348_v36, 4  ;;  %v1385_v39 = vadd.f32 %v1384_v37, %v1370_v35  ;;  %s1432_s22 = sshll.u32 %s432_s19, 4  ;;  %s2423_s16 = smov [#allocation13]   ;;  %s2916_s22 = int_to_ptr.vmem [resolvable:$true] %s1432_s22 }
 0x3b1   : > { %s2306_s12 = scalar_lea.vmem %s2916_s22, 128  ;;  %s2310_s15 = sshll.u32 %s2423_s16, 4  ;;  %s2311_s15 = int_to_ptr.vmem [resolvable:$false] %s2310_s15 }
 0x3b2   : > { %v1350_v40 = vadd.f32 %v1349_v38, %v1348_v36  ;;  %v1386_v41 = vrot.slane %v1385_v39, 4  ;;  %p2307_p8 = scmp.ne.s32.totalorder %s2916_s22, %s2306_s12  ;;  %s2312_s14 = scalar_lea.vmem %s2311_s15, 256 }
 0x3b3   : > { %p2313_p0 = scmp.lt.s32.totalorder %s2916_s22, %s2311_s15  ;;  %p2314_p7 = scmp.lt.s32.totalorder %s2312_s14, %s2306_s12 }
 0x3b4   : > { %v1351_v42 = vrot.slane %v1350_v40, 2  ;;  %v1387_v43 = vadd.f32 %v1386_v41, %v1385_v39  ;;  %s2914_s30 = scalar_lea.hbm %s3035_s7, %s1618_s21  ;;  %p2308_p12 = pnand %p2307_p8, %p3034_p13 }
 0x3b5   : > { %p2315_p5 = por %p2314_p7, %p2313_p0 }
 0x3b6   : > { %v1352_v44 = vadd.f32 %v1351_v42, %v1350_v40  ;;  %v1388_v45 = vrot.slane %v1387_v43, 2  ;;  %p2309_p3 = pneg %p2308_p12 }
 0x3b8   : > { %v1353_v46 = vrot.slane %v1352_v44, 1  ;;  %v1389_v47 = vadd.f32 %v1388_v45, %v1387_v43  ;;  %p2316_p9 = pnand %p2315_p5, %p2309_p3 }
 0x3ba   : > { %v1390_v48 = vrot.slane %v1389_v47, 1  ;;  %v1354_v49 = vadd.f32 %v1353_v46, %v1352_v44 }
 0x3bc   : > { %v1391_v50 = vadd.f32 %v1390_v48, %v1389_v47 }
 0x3be   : > { %v1393_v51 = vsel %vm1392_vm0, %v1354_v49, %v1391_v50 }
 0x3bf   : > { %v1395_v52 = vsel %vm1394_vm1, %v1393_v51, 0.0 }
 0x3c0   : > { %1396 = vst [vmem:[%s432_s19] sm:$0xff] %v1395_v52 }
 0x3c1   : > { %2319 = shalt.err (!%p2316_p9)
}
 0x3c2   : > { %s2320_s20 = scalar_lea.hbm %s2914_s30, 128  ;;  %s2324_s27 = scalar_lea.hbm %s3035_s7, 256 }
 0x3c3   : > { %p2321_p2 = scmp.ne.s32.totalorder %s2914_s30, %s2320_s20  ;;  %p2325_p6 = scmp.lt.u32.totalorder %s2914_s30, %s3035_s7 }
 0x3c4   : > { %p2326_p10 = scmp.lt.u32.totalorder %s2324_s27, %s2320_s20  ;;  %p2328_p8 = scmp.lt.u32.totalorder %s2320_s20, %s2914_s30 }
 0x3c5   : > { %p2322_p11 = pnand %p2321_p2, %p3034_p13 }
 0x3c6   : > { %p2327_p1 = por %p2326_p10, %p2325_p6 }
 0x3c7   : > { %p2323_p4 = pneg %p2322_p11 }
 0x3c8   : > { %p2329_p12 = por %p2328_p8, %p2327_p1 }
 0x3ca   : > { %p2330_p3 = pnand %p2329_p12, %p2323_p4 }
 0x3cc   : > { %2333 = shalt.err (!%p2330_p3)
}
 0x3cd   : > { %2001 = dma.vmem_to_hbm [thread:$0]  (%p3034_p13), %s2916_s22, 128, %s2914_s30, %s1403_s29  }
 0x3ce PF: > { %s3036_s0 = sld [smem:[#allocation22_spill]]  ;;  %s3037_s11 = sld [smem:[#allocation26_spill]] }
 0x3cf   : > { %s3038_s13 = sld [smem:[#allocation25_spill]] }
 0x3d4   : > { %s1444_s23 = sand.u32 1, %s3036_s0   ;;  %p3039_p0 = scmp.ne.s32.totalorder %s3037_s11, 0 }
 0x3d5   : > { %p3040_p7 = scmp.ge.s32.totalorder %s3038_s13, 2  ;;  %s1445_s1 = scalar_lea.sflag [#allocation5], %s1444_s23 }
 0x3d7   : > { %p2022_p5 = pnand %p3040_p7, %p3039_p0 }
 0x3d9   : > { %2379 = dma.done.wait (!%p2022_p5), %s1445_s1, 2048  }
 0x3da   : > { %2381 = vsyncadd (!%p2022_p5), %s1445_s1, 4294965248  ;;  %s1454_s26 = scalar_lea.sflag [#allocation14], %s1444_s23 }
 0x3db   : > { %2383 = dma.done.wait (!%p2022_p5), %s1454_s26, 128  }
 0x3dc   : > { %2385 = vsyncadd (!%p2022_p5), %s1454_s26, 4294967168  ;;  %s30_s10 = sadd.s32 1, %s3038_s13   ;;  %s3041_s6 = sld [smem:[#allocation23_spill]] }
 0x3dd   : > { %p27_p9 = scmp.ge.s32.totalorder %s30_s10, 4   ;;  %s3042_s29 = sld [smem:[#allocation29_spill]] }
 0x3de   : > { %s3043_s19 = sld [smem:[#allocation27_spill]]  ;;  %s3044_s27 = smov %s2392_s28 }
 0x3df   : > { %s3046_s30 = smov %s2404_s9  ;;  %29 = sbr.rel (!%p27_p9) target bundleno = 16 (0x10), region = 142 }
 0x3e2   : > { %s3045_s28 = smov %s3041_s6 }
 0x3e4   : > { %s3047_s9 = smov %s3043_s19 }
 0x3e6   :  { %1459 = vsyncpa [#allocation4], 1 }
 0x3e7   :  { %1461 = vsyncpa [#allocation4 + $0x1], 1 }
 0x3e8   :  { %1462 = vsyncpa [#allocation7], 1 }
 0x3e9   :  { %1463 = vsyncpa [#allocation11], 1 }
 0x3ea   :  { %1464 = vsyncpa [#allocation5], 1 }
 0x3eb   :  { %1466 = vsyncpa [#allocation5 + $0x1], 1 }
 0x3ec   :  { %1467 = vsyncpa [#allocation14], 1 }
 0x3ed   :  { %1469 = vsyncpa [#allocation14 + $0x1], 1 }

</bundles_post_ra>
